<compile_context>
chip_gen: v5e
topology: v5e:2x2
jax: 0.10.0
libtpu: 0.0.40
codegen_flags: <defaults>
</compile_context>

<pallas_src>
import functools
import math

import jax
import jax.numpy as jnp
from jax.experimental import pallas as pl
from jax.experimental.pallas import tpu as pltpu


# dot_general dimension_numbers for  a @ b.T  (contract last dim of both) so
# nn.Linear weights are consumed exactly as stored, (out, in): no host-side .T.
_TRANS_B = (((1,), (1,)), ((), ()))


# ----------------------------------------------------------------------------
# Kernel: one invocation == the whole decoder layer for all batch elements.
# ----------------------------------------------------------------------------
def _decoder_layer_kernel(
    x_ref, xc_ref,
    sa_in_w_ref, sa_in_b_ref, sa_out_w_ref, sa_out_b_ref,
    ca_q_w_ref, ca_q_b_ref, ca_kv_w_ref, ca_kv_b_ref,
    ca_out_w_ref, ca_out_b_ref,
    ff1_w_ref, ff1_b_ref, ff2_w_ref, ff2_b_ref,
    ln1_g_ref, ln1_b_ref, ln2_g_ref, ln2_b_ref, ln3_g_ref, ln3_b_ref,
    o_ref,
    *, nhead, eps, n_batch, q_len, kv_len):
    """x_ref: (N*L, E) f32 decoder tokens (batch-major), xc_ref: (N*S, E) f32
    encoder memory.  Weights are bf16 (out, in); biases / LN params are f32
    (1, n) rows.  Matmuls run bf16 on the MXU with f32 accumulation."""
    x = x_ref[...]                       # (N*L, E) f32
    xc = xc_ref[...]                     # (N*S, E) f32
    E = x.shape[-1]
    dh = E // nhead

    def linear(a, w_ref, b_ref):
        # a: (M, in) f32 activations; w: (out, in) bf16; b: (1, out) f32.
        y = jax.lax.dot_general(a.astype(jnp.bfloat16), w_ref[...], _TRANS_B,
                                preferred_element_type=jnp.float32)
        return y + b_ref[...]

    def layernorm(y, g_ref, b_ref):
        mean = jnp.mean(y, axis=-1, keepdims=True)
        cen = y - mean
        var = jnp.mean(cen * cen, axis=-1, keepdims=True)
        return cen * jax.lax.rsqrt(var + eps) * g_ref[...] + b_ref[...]

    def attend(q, k, v):
        # q: (N*L, E) f32, already scaled by 1/sqrt(dh) via folded weights;
        # k, v: (N*S, E) f32.  Batch rows are 8-sublane-aligned static slices;
        # per-head outputs are concatenated in registers (no VMEM scratch).
        out_rows = []
        for b in range(n_batch):                       # static unroll (tiny N)
            qb = q[b * q_len:(b + 1) * q_len].astype(jnp.bfloat16)
            kb = k[b * kv_len:(b + 1) * kv_len].astype(jnp.bfloat16)
            vb = v[b * kv_len:(b + 1) * kv_len].astype(jnp.bfloat16)
            heads = []
            for h in range(nhead):                     # static unroll
                sl = slice(h * dh, (h + 1) * dh)
                s = jax.lax.dot_general(qb[:, sl], kb[:, sl], _TRANS_B,
                                        preferred_element_type=jnp.float32)
                s = s - jnp.max(s, axis=-1, keepdims=True)        # (L, S) f32
                p = jnp.exp(s)
                denom = jnp.sum(p, axis=-1, keepdims=True)
                acc = jnp.dot(p.astype(jnp.bfloat16), vb[:, sl],
                              preferred_element_type=jnp.float32)  # (L, dh)
                # Normalize after PV (L*dh elems, not L*S); approx reciprocal
                # runs on the EUP slot and is essentially free.
                heads.append(acc * pl.reciprocal(denom, approx=True))
            out_rows.append(jnp.concatenate(heads, axis=-1))        # (L, E)
        return jnp.concatenate(out_rows, axis=0)                    # (N*L, E)

    # ---------------- self attention (fused QKV projection) -----------------
    qkv = linear(x, sa_in_w_ref, sa_in_b_ref)                 # (N*L, 3E)
    sa = attend(qkv[:, :E], qkv[:, E:2 * E], qkv[:, 2 * E:])
    sa = linear(sa, sa_out_w_ref, sa_out_b_ref)
    y = layernorm(x + sa, ln1_g_ref, ln1_b_ref)

    # ------------- cross attention (Q from y, fused KV from x_c) ------------
    q = linear(y, ca_q_w_ref, ca_q_b_ref)                     # (N*L, E)
    kv = linear(xc, ca_kv_w_ref, ca_kv_b_ref)                 # (N*S, 2E)
    ca = attend(q, kv[:, :E], kv[:, E:])
    ca = linear(ca, ca_out_w_ref, ca_out_b_ref)
    y = layernorm(y + ca, ln2_g_ref, ln2_b_ref)

    # ------------------------------ feed-forward ----------------------------
    h = jnp.maximum(linear(y, ff1_w_ref, ff1_b_ref), 0.0)     # ReLU
    ff = linear(h, ff2_w_ref, ff2_b_ref)
    y = layernorm(y + ff, ln3_g_ref, ln3_b_ref)

    o_ref[...] = y.astype(o_ref.dtype)


# ----------------------------------------------------------------------------
# One-time parameter preparation (NOT per-forward work).
# ----------------------------------------------------------------------------
def prepare_params(p, nhead, matmul_dtype=jnp.bfloat16):
    """Folds 1/sqrt(dh) into the Q rows of both in-proj weights/biases, splits
    the cross-attn in-proj into Q / fused-KV parts, casts weight matrices to
    bf16 for the MXU and reshapes biases / LN params to f32 (1, n) rows."""
    E = p["sa_out_w"].shape[0]
    scale = 1.0 / math.sqrt(E // nhead)

    sa_in_w = p["sa_in_w"].at[:E].multiply(scale)
    sa_in_b = p["sa_in_b"].at[:E].multiply(scale)
    ca_in_w = p["ca_in_w"].at[:E].multiply(scale)
    ca_in_b = p["ca_in_b"].at[:E].multiply(scale)

    def w(m):                                # MXU operand
        return m.astype(matmul_dtype)

    def row(v):                              # lane-major (1, n) f32 row
        return v.reshape(1, -1).astype(jnp.float32)

    return (
        w(sa_in_w), row(sa_in_b), w(p["sa_out_w"]), row(p["sa_out_b"]),
        w(ca_in_w[:E]), row(ca_in_b[:E]),    # cross-attn Q projection
        w(ca_in_w[E:]), row(ca_in_b[E:]),    # cross-attn fused KV projection
        w(p["ca_out_w"]), row(p["ca_out_b"]),
        w(p["ff1_w"]), row(p["ff1_b"]), w(p["ff2_w"]), row(p["ff2_b"]),
        row(p["ln1_g"]), row(p["ln1_b"]),
        row(p["ln2_g"]), row(p["ln2_b"]),
        row(p["ln3_g"]), row(p["ln3_b"]),
    )


# ----------------------------------------------------------------------------
# Wrapper
# ----------------------------------------------------------------------------
def decoder_layer_forward(x, x_c, prepared, nhead, eps=1e-5):
    """x: (L, N, E), x_c: (S, N, E), seq-first like nn.MultiheadAttention."""
    L, N, E = x.shape
    S = x_c.shape[0]

    # Seq-first -> batch-major flat token slabs.  These are the only layout
    # ops outside the kernel; all head split/concat happens in-register.
    x_slab = jnp.transpose(x, (1, 0, 2)).reshape(N * L, E)
    xc_slab = jnp.transpose(x_c, (1, 0, 2)).reshape(N * S, E)

    args = (x_slab, xc_slab) + tuple(prepared)

    def full_block(a):                       # whole array resident in VMEM
        nd = a.ndim
        return pl.BlockSpec(a.shape, lambda i, _nd=nd: (0,) * _nd)

    kernel = functools.partial(
        _decoder_layer_kernel, nhead=nhead, eps=eps,
        n_batch=N, q_len=L, kv_len=S)

    # Batch is folded into the block (single grid step): at these sizes the
    # per-step overhead of a batch grid dominates the work on one TensorCore.
    # TODO(synk): on v7x, split batch / L-tiles over a CORE_PARALLEL grid axis.
    out = pl.pallas_call(
        kernel,
        out_shape=jax.ShapeDtypeStruct((N * L, E), jnp.float32),
        grid=(1,),
        in_specs=[full_block(a) for a in args],
        out_specs=pl.BlockSpec((N * L, E), lambda i: (0, 0)),
        compiler_params=pltpu.CompilerParams(
            dimension_semantics=("arbitrary",)),
    )(*args)

    return jnp.transpose(out.reshape(N, L, E), (1, 0, 2))


# ----------------------------------------------------------------------------
# Pure-JAX f32 reference (for correctness check)
# ----------------------------------------------------------------------------
def _mha_ref(query, key, value, in_w, in_b, out_w, out_b, nhead):
    L, N, E = query.shape
    S = key.shape[0]
    dh = E // nhead
    wq, wk, wv = in_w[:E], in_w[E:2 * E], in_w[2 * E:]
    bq, bk, bv = in_b[:E], in_b[E:2 * E], in_b[2 * E:]
    q = (query @ wq.T + bq).reshape(L, N, nhead, dh).transpose(1, 2, 0, 3)
    k = (key @ wk.T + bk).reshape(S, N, nhead, dh).transpose(1, 2, 0, 3)
    v = (value @ wv.T + bv).reshape(S, N, nhead, dh).transpose(1, 2, 0, 3)
    s = jnp.einsum("bhld,bhsd->bhls", q, k) / math.sqrt(dh)
    a = jax.nn.softmax(s, axis=-1)
    o = jnp.einsum("bhls,bhsd->bhld", a, v)
    o = o.transpose(2, 0, 1, 3).reshape(L, N, E)
    return o @ out_w.T + out_b


def _ln_ref(x, g, b, eps=1e-5):
    m = jnp.mean(x, axis=-1, keepdims=True)
    v = jnp.mean((x - m) ** 2, axis=-1, keepdims=True)
    return (x - m) * jax.lax.rsqrt(v + eps) * g + b


def decoder_layer_ref(x, x_c, p, nhead):
    sa = _mha_ref(x, x, x, p["sa_in_w"], p["sa_in_b"],
                  p["sa_out_w"], p["sa_out_b"], nhead)
    x = _ln_ref(x + sa, p["ln1_g"], p["ln1_b"])
    ca = _mha_ref(x, x_c, x_c, p["ca_in_w"], p["ca_in_b"],
                  p["ca_out_w"], p["ca_out_b"], nhead)
    x = _ln_ref(x + ca, p["ln2_g"], p["ln2_b"])
    h = jnp.maximum(x @ p["ff1_w"].T + p["ff1_b"], 0.0)
    ff = h @ p["ff2_w"].T + p["ff2_b"]
    x = _ln_ref(x + ff, p["ln3_g"], p["ln3_b"])
    return x


# ----------------------------------------------------------------------------
# Main
# ----------------------------------------------------------------------------
if __name__ == "__main__":
    L, N, E, H, DFF = 8, 2, 32, 4, 64    # seq, batch, d_model, nhead, d_ff

    key = jax.random.PRNGKey(0)
    ks = jax.random.split(key, 16)

    def init(k, shape, scale=0.05):
        return (scale * jax.random.normal(k, shape)).astype(jnp.float32)

    params = {
        # self attention
        "sa_in_w": init(ks[0], (3 * E, E)),
        "sa_in_b": init(ks[1], (3 * E,)),
        "sa_out_w": init(ks[2], (E, E)),
        "sa_out_b": init(ks[3], (E,)),
        # cross attention
        "ca_in_w": init(ks[4], (3 * E, E)),
        "ca_in_b": init(ks[5], (3 * E,)),
        "ca_out_w": init(ks[6], (E, E)),
        "ca_out_b": init(ks[7], (E,)),
        # feed-forward
        "ff1_w": init(ks[8], (DFF, E)),
        "ff1_b": init(ks[9], (DFF,)),
        "ff2_w": init(ks[10], (E, DFF)),
        "ff2_b": init(ks[11], (E,)),
        # layer norms
        "ln1_g": jnp.ones((E,), jnp.float32), "ln1_b": jnp.zeros((E,), jnp.float32),
        "ln2_g": jnp.ones((E,), jnp.float32), "ln2_b": jnp.zeros((E,), jnp.float32),
        "ln3_g": jnp.ones((E,), jnp.float32), "ln3_b": jnp.zeros((E,), jnp.float32),
    }

    x = init(ks[12], (L, N, E), scale=1.0)
    x_c = init(ks[13], (L, N, E), scale=1.0)

    prepared = prepare_params(params, H)     # one-time weight transform
    out = decoder_layer_forward(x, x_c, prepared, H)
    out = jax.block_until_ready(out)

    ref = decoder_layer_ref(x, x_c, params, H)
    assert out.shape == (L, N, E)
    # bf16 MXU operands + approx reciprocal -> bf16-level tolerance vs f32 ref.
    assert jnp.allclose(out, ref, atol=2e-2, rtol=2e-2), "mismatch vs reference"

    print("KERNEL_OK")
</pallas_src>

<mosaic_0001>
module attributes {stable_mosaic.version = 11 : i64} {
  func.func @_decoder_layer_kernel(%arg0: i32, %arg1: memref<16x32xf32, #tpu.memory_space<vmem>>, %arg2: memref<16x32xf32, #tpu.memory_space<vmem>>, %arg3: memref<96x32xbf16, #tpu.memory_space<vmem>>, %arg4: memref<1x96xf32, #tpu.memory_space<vmem>>, %arg5: memref<32x32xbf16, #tpu.memory_space<vmem>>, %arg6: memref<1x32xf32, #tpu.memory_space<vmem>>, %arg7: memref<32x32xbf16, #tpu.memory_space<vmem>>, %arg8: memref<1x32xf32, #tpu.memory_space<vmem>>, %arg9: memref<64x32xbf16, #tpu.memory_space<vmem>>, %arg10: memref<1x64xf32, #tpu.memory_space<vmem>>, %arg11: memref<32x32xbf16, #tpu.memory_space<vmem>>, %arg12: memref<1x32xf32, #tpu.memory_space<vmem>>, %arg13: memref<64x32xbf16, #tpu.memory_space<vmem>>, %arg14: memref<1x64xf32, #tpu.memory_space<vmem>>, %arg15: memref<32x64xbf16, #tpu.memory_space<vmem>>, %arg16: memref<1x32xf32, #tpu.memory_space<vmem>>, %arg17: memref<1x32xf32, #tpu.memory_space<vmem>>, %arg18: memref<1x32xf32, #tpu.memory_space<vmem>>, %arg19: memref<1x32xf32, #tpu.memory_space<vmem>>, %arg20: memref<1x32xf32, #tpu.memory_space<vmem>>, %arg21: memref<1x32xf32, #tpu.memory_space<vmem>>, %arg22: memref<1x32xf32, #tpu.memory_space<vmem>>, %arg23: memref<16x32xf32, #tpu.memory_space<vmem>>) attributes {dimension_semantics = [#tpu.dimension_semantics<arbitrary>], iteration_bounds = array<i64: 1>, scalar_prefetch = 0 : i64, scratch_operands = 0 : i64, tpu.core_type = #tpu.core_type<tc>, window_params = [{pipeline_mode = #tpu.pipeline_mode<synchronous>, transform_indices = @transform_0, window_bounds = array<i64: 16, 32>}, {pipeline_mode = #tpu.pipeline_mode<synchronous>, transform_indices = @transform_1, window_bounds = array<i64: 16, 32>}, {pipeline_mode = #tpu.pipeline_mode<synchronous>, transform_indices = @transform_2, window_bounds = array<i64: 96, 32>}, {pipeline_mode = #tpu.pipeline_mode<synchronous>, transform_indices = @transform_3, window_bounds = array<i64: 1, 96>}, {pipeline_mode = #tpu.pipeline_mode<synchronous>, transform_indices = @transform_4, window_bounds = array<i64: 32, 32>}, {pipeline_mode = #tpu.pipeline_mode<synchronous>, transform_indices = @transform_5, window_bounds = array<i64: 1, 32>}, {pipeline_mode = #tpu.pipeline_mode<synchronous>, transform_indices = @transform_6, window_bounds = array<i64: 32, 32>}, {pipeline_mode = #tpu.pipeline_mode<synchronous>, transform_indices = @transform_7, window_bounds = array<i64: 1, 32>}, {pipeline_mode = #tpu.pipeline_mode<synchronous>, transform_indices = @transform_8, window_bounds = array<i64: 64, 32>}, {pipeline_mode = #tpu.pipeline_mode<synchronous>, transform_indices = @transform_9, window_bounds = array<i64: 1, 64>}, {pipeline_mode = #tpu.pipeline_mode<synchronous>, transform_indices = @transform_10, window_bounds = array<i64: 32, 32>}, {pipeline_mode = #tpu.pipeline_mode<synchronous>, transform_indices = @transform_11, window_bounds = array<i64: 1, 32>}, {pipeline_mode = #tpu.pipeline_mode<synchronous>, transform_indices = @transform_12, window_bounds = array<i64: 64, 32>}, {pipeline_mode = #tpu.pipeline_mode<synchronous>, transform_indices = @transform_13, window_bounds = array<i64: 1, 64>}, {pipeline_mode = #tpu.pipeline_mode<synchronous>, transform_indices = @transform_14, window_bounds = array<i64: 32, 64>}, {pipeline_mode = #tpu.pipeline_mode<synchronous>, transform_indices = @transform_15, window_bounds = array<i64: 1, 32>}, {pipeline_mode = #tpu.pipeline_mode<synchronous>, transform_indices = @transform_16, window_bounds = array<i64: 1, 32>}, {pipeline_mode = #tpu.pipeline_mode<synchronous>, transform_indices = @transform_17, window_bounds = array<i64: 1, 32>}, {pipeline_mode = #tpu.pipeline_mode<synchronous>, transform_indices = @transform_18, window_bounds = array<i64: 1, 32>}, {pipeline_mode = #tpu.pipeline_mode<synchronous>, transform_indices = @transform_19, window_bounds = array<i64: 1, 32>}, {pipeline_mode = #tpu.pipeline_mode<synchronous>, transform_indices = @transform_20, window_bounds = array<i64: 1, 32>}, {pipeline_mode = #tpu.pipeline_mode<synchronous>, transform_indices = @transform_21, window_bounds = array<i64: 1, 32>}, {pipeline_mode = #tpu.pipeline_mode<synchronous>, transform_indices = @transform_22, window_bounds = array<i64: 16, 32>}]} {
    %c0 = arith.constant 0 : index
    %c0_0 = arith.constant 0 : index
    %0 = vector.load %arg1[%c0, %c0_0] : memref<16x32xf32, #tpu.memory_space<vmem>>, vector<16x32xf32>
    %c0_1 = arith.constant 0 : index
    %c0_2 = arith.constant 0 : index
    %1 = vector.load %arg2[%c0_1, %c0_2] : memref<16x32xf32, #tpu.memory_space<vmem>>, vector<16x32xf32>
    %2 = arith.truncf %0 : vector<16x32xf32> to vector<16x32xbf16>
    %c0_3 = arith.constant 0 : index
    %c0_4 = arith.constant 0 : index
    %3 = vector.load %arg3[%c0_3, %c0_4] : memref<96x32xbf16, #tpu.memory_space<vmem>>, vector<96x32xbf16>
    %cst = arith.constant dense<0.000000e+00> : vector<16x96xf32>
    %4 = tpu.matmul %2, %3, %cst {dimension_numbers = #tpu.dot_dimension_numbers<[1], [1], [0], [0], [0, 0, 1, 0], [], []>} : vector<16x32xbf16>, vector<96x32xbf16>, vector<16x96xf32> -> vector<16x96xf32>
    %c0_5 = arith.constant 0 : index
    %c0_6 = arith.constant 0 : index
    %5 = vector.load %arg4[%c0_5, %c0_6] : memref<1x96xf32, #tpu.memory_space<vmem>>, vector<1x96xf32>
    %6 = vector.broadcast %5 : vector<1x96xf32> to vector<16x96xf32>
    %7 = arith.addf %4, %6 : vector<16x96xf32>
    %8 = vector.extract_strided_slice %7 {offsets = [0, 0], sizes = [16, 32], strides = [1, 1]} : vector<16x96xf32> to vector<16x32xf32>
    %9 = vector.extract_strided_slice %7 {offsets = [0, 32], sizes = [16, 32], strides = [1, 1]} : vector<16x96xf32> to vector<16x32xf32>
    %10 = vector.extract_strided_slice %7 {offsets = [0, 64], sizes = [16, 32], strides = [1, 1]} : vector<16x96xf32> to vector<16x32xf32>
    %11 = vector.extract_strided_slice %8 {offsets = [0, 0], sizes = [8, 32], strides = [1, 1]} : vector<16x32xf32> to vector<8x32xf32>
    %12 = arith.truncf %11 : vector<8x32xf32> to vector<8x32xbf16>
    %13 = vector.extract_strided_slice %9 {offsets = [0, 0], sizes = [8, 32], strides = [1, 1]} : vector<16x32xf32> to vector<8x32xf32>
    %14 = arith.truncf %13 : vector<8x32xf32> to vector<8x32xbf16>
    %15 = vector.extract_strided_slice %10 {offsets = [0, 0], sizes = [8, 32], strides = [1, 1]} : vector<16x32xf32> to vector<8x32xf32>
    %16 = arith.truncf %15 : vector<8x32xf32> to vector<8x32xbf16>
    %17 = vector.extract_strided_slice %12 {offsets = [0, 0], sizes = [8, 8], strides = [1, 1]} : vector<8x32xbf16> to vector<8x8xbf16>
    %18 = vector.extract_strided_slice %14 {offsets = [0, 0], sizes = [8, 8], strides = [1, 1]} : vector<8x32xbf16> to vector<8x8xbf16>
    %cst_7 = arith.constant dense<0.000000e+00> : vector<8x8xf32>
    %19 = tpu.matmul %17, %18, %cst_7 {dimension_numbers = #tpu.dot_dimension_numbers<[1], [1], [0], [0], [0, 0, 1, 0], [], []>} : vector<8x8xbf16>, vector<8x8xbf16>, vector<8x8xf32> -> vector<8x8xf32>
    %cst_8 = arith.constant dense<0xFF800000> : vector<8xf32>
    %20 = vector.multi_reduction <maximumf>, %19, %cst_8 [1] : vector<8x8xf32> to vector<8xf32>
    %21 = vector.shape_cast %20 : vector<8xf32> to vector<8x1xf32>
    %22 = vector.broadcast %21 : vector<8x1xf32> to vector<8x8xf32>
    %23 = arith.subf %19, %22 : vector<8x8xf32>
    %24 = math.exp %23 : vector<8x8xf32>
    %cst_9 = arith.constant dense<0.000000e+00> : vector<8xf32>
    %25 = vector.multi_reduction <add>, %24, %cst_9 [1] : vector<8x8xf32> to vector<8xf32>
    %26 = vector.shape_cast %25 : vector<8xf32> to vector<8x1xf32>
    %27 = arith.truncf %24 : vector<8x8xf32> to vector<8x8xbf16>
    %28 = vector.extract_strided_slice %16 {offsets = [0, 0], sizes = [8, 8], strides = [1, 1]} : vector<8x32xbf16> to vector<8x8xbf16>
    %cst_10 = arith.constant dense<0.000000e+00> : vector<8x8xf32>
    %29 = tpu.matmul %27, %28, %cst_10 {dimension_numbers = #tpu.dot_dimension_numbers<[1], [0], [0], [1], [0, 0, 1, 1], [], []>} : vector<8x8xbf16>, vector<8x8xbf16>, vector<8x8xf32> -> vector<8x8xf32>
    %30 = tpu.reciprocal %26 {approx = true} : vector<8x1xf32> -> vector<8x1xf32>
    %31 = vector.broadcast %30 : vector<8x1xf32> to vector<8x8xf32>
    %32 = arith.mulf %29, %31 : vector<8x8xf32>
    %33 = vector.extract_strided_slice %12 {offsets = [0, 8], sizes = [8, 8], strides = [1, 1]} : vector<8x32xbf16> to vector<8x8xbf16>
    %34 = vector.extract_strided_slice %14 {offsets = [0, 8], sizes = [8, 8], strides = [1, 1]} : vector<8x32xbf16> to vector<8x8xbf16>
    %cst_11 = arith.constant dense<0.000000e+00> : vector<8x8xf32>
    %35 = tpu.matmul %33, %34, %cst_11 {dimension_numbers = #tpu.dot_dimension_numbers<[1], [1], [0], [0], [0, 0, 1, 0], [], []>} : vector<8x8xbf16>, vector<8x8xbf16>, vector<8x8xf32> -> vector<8x8xf32>
    %cst_12 = arith.constant dense<0xFF800000> : vector<8xf32>
    %36 = vector.multi_reduction <maximumf>, %35, %cst_12 [1] : vector<8x8xf32> to vector<8xf32>
    %37 = vector.shape_cast %36 : vector<8xf32> to vector<8x1xf32>
    %38 = vector.broadcast %37 : vector<8x1xf32> to vector<8x8xf32>
    %39 = arith.subf %35, %38 : vector<8x8xf32>
    %40 = math.exp %39 : vector<8x8xf32>
    %cst_13 = arith.constant dense<0.000000e+00> : vector<8xf32>
    %41 = vector.multi_reduction <add>, %40, %cst_13 [1] : vector<8x8xf32> to vector<8xf32>
    %42 = vector.shape_cast %41 : vector<8xf32> to vector<8x1xf32>
    %43 = arith.truncf %40 : vector<8x8xf32> to vector<8x8xbf16>
    %44 = vector.extract_strided_slice %16 {offsets = [0, 8], sizes = [8, 8], strides = [1, 1]} : vector<8x32xbf16> to vector<8x8xbf16>
    %cst_14 = arith.constant dense<0.000000e+00> : vector<8x8xf32>
    %45 = tpu.matmul %43, %44, %cst_14 {dimension_numbers = #tpu.dot_dimension_numbers<[1], [0], [0], [1], [0, 0, 1, 1], [], []>} : vector<8x8xbf16>, vector<8x8xbf16>, vector<8x8xf32> -> vector<8x8xf32>
    %46 = tpu.reciprocal %42 {approx = true} : vector<8x1xf32> -> vector<8x1xf32>
    %47 = vector.broadcast %46 : vector<8x1xf32> to vector<8x8xf32>
    %48 = arith.mulf %45, %47 : vector<8x8xf32>
    %49 = vector.extract_strided_slice %12 {offsets = [0, 16], sizes = [8, 8], strides = [1, 1]} : vector<8x32xbf16> to vector<8x8xbf16>
    %50 = vector.extract_strided_slice %14 {offsets = [0, 16], sizes = [8, 8], strides = [1, 1]} : vector<8x32xbf16> to vector<8x8xbf16>
    %cst_15 = arith.constant dense<0.000000e+00> : vector<8x8xf32>
    %51 = tpu.matmul %49, %50, %cst_15 {dimension_numbers = #tpu.dot_dimension_numbers<[1], [1], [0], [0], [0, 0, 1, 0], [], []>} : vector<8x8xbf16>, vector<8x8xbf16>, vector<8x8xf32> -> vector<8x8xf32>
    %cst_16 = arith.constant dense<0xFF800000> : vector<8xf32>
    %52 = vector.multi_reduction <maximumf>, %51, %cst_16 [1] : vector<8x8xf32> to vector<8xf32>
    %53 = vector.shape_cast %52 : vector<8xf32> to vector<8x1xf32>
    %54 = vector.broadcast %53 : vector<8x1xf32> to vector<8x8xf32>
    %55 = arith.subf %51, %54 : vector<8x8xf32>
    %56 = math.exp %55 : vector<8x8xf32>
    %cst_17 = arith.constant dense<0.000000e+00> : vector<8xf32>
    %57 = vector.multi_reduction <add>, %56, %cst_17 [1] : vector<8x8xf32> to vector<8xf32>
    %58 = vector.shape_cast %57 : vector<8xf32> to vector<8x1xf32>
    %59 = arith.truncf %56 : vector<8x8xf32> to vector<8x8xbf16>
    %60 = vector.extract_strided_slice %16 {offsets = [0, 16], sizes = [8, 8], strides = [1, 1]} : vector<8x32xbf16> to vector<8x8xbf16>
    %cst_18 = arith.constant dense<0.000000e+00> : vector<8x8xf32>
    %61 = tpu.matmul %59, %60, %cst_18 {dimension_numbers = #tpu.dot_dimension_numbers<[1], [0], [0], [1], [0, 0, 1, 1], [], []>} : vector<8x8xbf16>, vector<8x8xbf16>, vector<8x8xf32> -> vector<8x8xf32>
    %62 = tpu.reciprocal %58 {approx = true} : vector<8x1xf32> -> vector<8x1xf32>
    %63 = vector.broadcast %62 : vector<8x1xf32> to vector<8x8xf32>
    %64 = arith.mulf %61, %63 : vector<8x8xf32>
    %65 = vector.extract_strided_slice %12 {offsets = [0, 24], sizes = [8, 8], strides = [1, 1]} : vector<8x32xbf16> to vector<8x8xbf16>
    %66 = vector.extract_strided_slice %14 {offsets = [0, 24], sizes = [8, 8], strides = [1, 1]} : vector<8x32xbf16> to vector<8x8xbf16>
    %cst_19 = arith.constant dense<0.000000e+00> : vector<8x8xf32>
    %67 = tpu.matmul %65, %66, %cst_19 {dimension_numbers = #tpu.dot_dimension_numbers<[1], [1], [0], [0], [0, 0, 1, 0], [], []>} : vector<8x8xbf16>, vector<8x8xbf16>, vector<8x8xf32> -> vector<8x8xf32>
    %cst_20 = arith.constant dense<0xFF800000> : vector<8xf32>
    %68 = vector.multi_reduction <maximumf>, %67, %cst_20 [1] : vector<8x8xf32> to vector<8xf32>
    %69 = vector.shape_cast %68 : vector<8xf32> to vector<8x1xf32>
    %70 = vector.broadcast %69 : vector<8x1xf32> to vector<8x8xf32>
    %71 = arith.subf %67, %70 : vector<8x8xf32>
    %72 = math.exp %71 : vector<8x8xf32>
    %cst_21 = arith.constant dense<0.000000e+00> : vector<8xf32>
    %73 = vector.multi_reduction <add>, %72, %cst_21 [1] : vector<8x8xf32> to vector<8xf32>
    %74 = vector.shape_cast %73 : vector<8xf32> to vector<8x1xf32>
    %75 = arith.truncf %72 : vector<8x8xf32> to vector<8x8xbf16>
    %76 = vector.extract_strided_slice %16 {offsets = [0, 24], sizes = [8, 8], strides = [1, 1]} : vector<8x32xbf16> to vector<8x8xbf16>
    %cst_22 = arith.constant dense<0.000000e+00> : vector<8x8xf32>
    %77 = tpu.matmul %75, %76, %cst_22 {dimension_numbers = #tpu.dot_dimension_numbers<[1], [0], [0], [1], [0, 0, 1, 1], [], []>} : vector<8x8xbf16>, vector<8x8xbf16>, vector<8x8xf32> -> vector<8x8xf32>
    %78 = tpu.reciprocal %74 {approx = true} : vector<8x1xf32> -> vector<8x1xf32>
    %79 = vector.broadcast %78 : vector<8x1xf32> to vector<8x8xf32>
    %80 = arith.mulf %77, %79 : vector<8x8xf32>
    %81 = tpu.concatenate %32, %48, %64, %80 in 1 : vector<8x8xf32>, vector<8x8xf32>, vector<8x8xf32>, vector<8x8xf32> -> vector<8x32xf32>
    %82 = vector.extract_strided_slice %8 {offsets = [8, 0], sizes = [8, 32], strides = [1, 1]} : vector<16x32xf32> to vector<8x32xf32>
    %83 = arith.truncf %82 : vector<8x32xf32> to vector<8x32xbf16>
    %84 = vector.extract_strided_slice %9 {offsets = [8, 0], sizes = [8, 32], strides = [1, 1]} : vector<16x32xf32> to vector<8x32xf32>
    %85 = arith.truncf %84 : vector<8x32xf32> to vector<8x32xbf16>
    %86 = vector.extract_strided_slice %10 {offsets = [8, 0], sizes = [8, 32], strides = [1, 1]} : vector<16x32xf32> to vector<8x32xf32>
    %87 = arith.truncf %86 : vector<8x32xf32> to vector<8x32xbf16>
    %88 = vector.extract_strided_slice %83 {offsets = [0, 0], sizes = [8, 8], strides = [1, 1]} : vector<8x32xbf16> to vector<8x8xbf16>
    %89 = vector.extract_strided_slice %85 {offsets = [0, 0], sizes = [8, 8], strides = [1, 1]} : vector<8x32xbf16> to vector<8x8xbf16>
    %cst_23 = arith.constant dense<0.000000e+00> : vector<8x8xf32>
    %90 = tpu.matmul %88, %89, %cst_23 {dimension_numbers = #tpu.dot_dimension_numbers<[1], [1], [0], [0], [0, 0, 1, 0], [], []>} : vector<8x8xbf16>, vector<8x8xbf16>, vector<8x8xf32> -> vector<8x8xf32>
    %cst_24 = arith.constant dense<0xFF800000> : vector<8xf32>
    %91 = vector.multi_reduction <maximumf>, %90, %cst_24 [1] : vector<8x8xf32> to vector<8xf32>
    %92 = vector.shape_cast %91 : vector<8xf32> to vector<8x1xf32>
    %93 = vector.broadcast %92 : vector<8x1xf32> to vector<8x8xf32>
    %94 = arith.subf %90, %93 : vector<8x8xf32>
    %95 = math.exp %94 : vector<8x8xf32>
    %cst_25 = arith.constant dense<0.000000e+00> : vector<8xf32>
    %96 = vector.multi_reduction <add>, %95, %cst_25 [1] : vector<8x8xf32> to vector<8xf32>
    %97 = vector.shape_cast %96 : vector<8xf32> to vector<8x1xf32>
    %98 = arith.truncf %95 : vector<8x8xf32> to vector<8x8xbf16>
    %99 = vector.extract_strided_slice %87 {offsets = [0, 0], sizes = [8, 8], strides = [1, 1]} : vector<8x32xbf16> to vector<8x8xbf16>
    %cst_26 = arith.constant dense<0.000000e+00> : vector<8x8xf32>
    %100 = tpu.matmul %98, %99, %cst_26 {dimension_numbers = #tpu.dot_dimension_numbers<[1], [0], [0], [1], [0, 0, 1, 1], [], []>} : vector<8x8xbf16>, vector<8x8xbf16>, vector<8x8xf32> -> vector<8x8xf32>
    %101 = tpu.reciprocal %97 {approx = true} : vector<8x1xf32> -> vector<8x1xf32>
    %102 = vector.broadcast %101 : vector<8x1xf32> to vector<8x8xf32>
    %103 = arith.mulf %100, %102 : vector<8x8xf32>
    %104 = vector.extract_strided_slice %83 {offsets = [0, 8], sizes = [8, 8], strides = [1, 1]} : vector<8x32xbf16> to vector<8x8xbf16>
    %105 = vector.extract_strided_slice %85 {offsets = [0, 8], sizes = [8, 8], strides = [1, 1]} : vector<8x32xbf16> to vector<8x8xbf16>
    %cst_27 = arith.constant dense<0.000000e+00> : vector<8x8xf32>
    %106 = tpu.matmul %104, %105, %cst_27 {dimension_numbers = #tpu.dot_dimension_numbers<[1], [1], [0], [0], [0, 0, 1, 0], [], []>} : vector<8x8xbf16>, vector<8x8xbf16>, vector<8x8xf32> -> vector<8x8xf32>
    %cst_28 = arith.constant dense<0xFF800000> : vector<8xf32>
    %107 = vector.multi_reduction <maximumf>, %106, %cst_28 [1] : vector<8x8xf32> to vector<8xf32>
    %108 = vector.shape_cast %107 : vector<8xf32> to vector<8x1xf32>
    %109 = vector.broadcast %108 : vector<8x1xf32> to vector<8x8xf32>
    %110 = arith.subf %106, %109 : vector<8x8xf32>
    %111 = math.exp %110 : vector<8x8xf32>
    %cst_29 = arith.constant dense<0.000000e+00> : vector<8xf32>
    %112 = vector.multi_reduction <add>, %111, %cst_29 [1] : vector<8x8xf32> to vector<8xf32>
    %113 = vector.shape_cast %112 : vector<8xf32> to vector<8x1xf32>
    %114 = arith.truncf %111 : vector<8x8xf32> to vector<8x8xbf16>
    %115 = vector.extract_strided_slice %87 {offsets = [0, 8], sizes = [8, 8], strides = [1, 1]} : vector<8x32xbf16> to vector<8x8xbf16>
    %cst_30 = arith.constant dense<0.000000e+00> : vector<8x8xf32>
    %116 = tpu.matmul %114, %115, %cst_30 {dimension_numbers = #tpu.dot_dimension_numbers<[1], [0], [0], [1], [0, 0, 1, 1], [], []>} : vector<8x8xbf16>, vector<8x8xbf16>, vector<8x8xf32> -> vector<8x8xf32>
    %117 = tpu.reciprocal %113 {approx = true} : vector<8x1xf32> -> vector<8x1xf32>
    %118 = vector.broadcast %117 : vector<8x1xf32> to vector<8x8xf32>
    %119 = arith.mulf %116, %118 : vector<8x8xf32>
    %120 = vector.extract_strided_slice %83 {offsets = [0, 16], sizes = [8, 8], strides = [1, 1]} : vector<8x32xbf16> to vector<8x8xbf16>
    %121 = vector.extract_strided_slice %85 {offsets = [0, 16], sizes = [8, 8], strides = [1, 1]} : vector<8x32xbf16> to vector<8x8xbf16>
    %cst_31 = arith.constant dense<0.000000e+00> : vector<8x8xf32>
    %122 = tpu.matmul %120, %121, %cst_31 {dimension_numbers = #tpu.dot_dimension_numbers<[1], [1], [0], [0], [0, 0, 1, 0], [], []>} : vector<8x8xbf16>, vector<8x8xbf16>, vector<8x8xf32> -> vector<8x8xf32>
    %cst_32 = arith.constant dense<0xFF800000> : vector<8xf32>
    %123 = vector.multi_reduction <maximumf>, %122, %cst_32 [1] : vector<8x8xf32> to vector<8xf32>
    %124 = vector.shape_cast %123 : vector<8xf32> to vector<8x1xf32>
    %125 = vector.broadcast %124 : vector<8x1xf32> to vector<8x8xf32>
    %126 = arith.subf %122, %125 : vector<8x8xf32>
    %127 = math.exp %126 : vector<8x8xf32>
    %cst_33 = arith.constant dense<0.000000e+00> : vector<8xf32>
    %128 = vector.multi_reduction <add>, %127, %cst_33 [1] : vector<8x8xf32> to vector<8xf32>
    %129 = vector.shape_cast %128 : vector<8xf32> to vector<8x1xf32>
    %130 = arith.truncf %127 : vector<8x8xf32> to vector<8x8xbf16>
    %131 = vector.extract_strided_slice %87 {offsets = [0, 16], sizes = [8, 8], strides = [1, 1]} : vector<8x32xbf16> to vector<8x8xbf16>
    %cst_34 = arith.constant dense<0.000000e+00> : vector<8x8xf32>
    %132 = tpu.matmul %130, %131, %cst_34 {dimension_numbers = #tpu.dot_dimension_numbers<[1], [0], [0], [1], [0, 0, 1, 1], [], []>} : vector<8x8xbf16>, vector<8x8xbf16>, vector<8x8xf32> -> vector<8x8xf32>
    %133 = tpu.reciprocal %129 {approx = true} : vector<8x1xf32> -> vector<8x1xf32>
    %134 = vector.broadcast %133 : vector<8x1xf32> to vector<8x8xf32>
    %135 = arith.mulf %132, %134 : vector<8x8xf32>
    %136 = vector.extract_strided_slice %83 {offsets = [0, 24], sizes = [8, 8], strides = [1, 1]} : vector<8x32xbf16> to vector<8x8xbf16>
    %137 = vector.extract_strided_slice %85 {offsets = [0, 24], sizes = [8, 8], strides = [1, 1]} : vector<8x32xbf16> to vector<8x8xbf16>
    %cst_35 = arith.constant dense<0.000000e+00> : vector<8x8xf32>
    %138 = tpu.matmul %136, %137, %cst_35 {dimension_numbers = #tpu.dot_dimension_numbers<[1], [1], [0], [0], [0, 0, 1, 0], [], []>} : vector<8x8xbf16>, vector<8x8xbf16>, vector<8x8xf32> -> vector<8x8xf32>
    %cst_36 = arith.constant dense<0xFF800000> : vector<8xf32>
    %139 = vector.multi_reduction <maximumf>, %138, %cst_36 [1] : vector<8x8xf32> to vector<8xf32>
    %140 = vector.shape_cast %139 : vector<8xf32> to vector<8x1xf32>
    %141 = vector.broadcast %140 : vector<8x1xf32> to vector<8x8xf32>
    %142 = arith.subf %138, %141 : vector<8x8xf32>
    %143 = math.exp %142 : vector<8x8xf32>
    %cst_37 = arith.constant dense<0.000000e+00> : vector<8xf32>
    %144 = vector.multi_reduction <add>, %143, %cst_37 [1] : vector<8x8xf32> to vector<8xf32>
    %145 = vector.shape_cast %144 : vector<8xf32> to vector<8x1xf32>
    %146 = arith.truncf %143 : vector<8x8xf32> to vector<8x8xbf16>
    %147 = vector.extract_strided_slice %87 {offsets = [0, 24], sizes = [8, 8], strides = [1, 1]} : vector<8x32xbf16> to vector<8x8xbf16>
    %cst_38 = arith.constant dense<0.000000e+00> : vector<8x8xf32>
    %148 = tpu.matmul %146, %147, %cst_38 {dimension_numbers = #tpu.dot_dimension_numbers<[1], [0], [0], [1], [0, 0, 1, 1], [], []>} : vector<8x8xbf16>, vector<8x8xbf16>, vector<8x8xf32> -> vector<8x8xf32>
    %149 = tpu.reciprocal %145 {approx = true} : vector<8x1xf32> -> vector<8x1xf32>
    %150 = vector.broadcast %149 : vector<8x1xf32> to vector<8x8xf32>
    %151 = arith.mulf %148, %150 : vector<8x8xf32>
    %152 = tpu.concatenate %103, %119, %135, %151 in 1 : vector<8x8xf32>, vector<8x8xf32>, vector<8x8xf32>, vector<8x8xf32> -> vector<8x32xf32>
    %153 = tpu.concatenate %81, %152 in 0 : vector<8x32xf32>, vector<8x32xf32> -> vector<16x32xf32>
    %154 = arith.truncf %153 : vector<16x32xf32> to vector<16x32xbf16>
    %c0_39 = arith.constant 0 : index
    %c0_40 = arith.constant 0 : index
    %155 = vector.load %arg5[%c0_39, %c0_40] : memref<32x32xbf16, #tpu.memory_space<vmem>>, vector<32x32xbf16>
    %cst_41 = arith.constant dense<0.000000e+00> : vector<16x32xf32>
    %156 = tpu.matmul %154, %155, %cst_41 {dimension_numbers = #tpu.dot_dimension_numbers<[1], [1], [0], [0], [0, 0, 1, 0], [], []>} : vector<16x32xbf16>, vector<32x32xbf16>, vector<16x32xf32> -> vector<16x32xf32>
    %c0_42 = arith.constant 0 : index
    %c0_43 = arith.constant 0 : index
    %157 = vector.load %arg6[%c0_42, %c0_43] : memref<1x32xf32, #tpu.memory_space<vmem>>, vector<1x32xf32>
    %158 = vector.broadcast %157 : vector<1x32xf32> to vector<16x32xf32>
    %159 = arith.addf %156, %158 : vector<16x32xf32>
    %160 = arith.addf %0, %159 : vector<16x32xf32>
    %cst_44 = arith.constant dense<0.000000e+00> : vector<16xf32>
    %161 = vector.multi_reduction <add>, %160, %cst_44 [1] : vector<16x32xf32> to vector<16xf32>
    %162 = vector.shape_cast %161 : vector<16xf32> to vector<16x1xf32>
    %cst_45 = arith.constant 3.200000e+01 : f32
    %163 = vector.broadcast %cst_45 : f32 to vector<16x1xf32>
    %164 = arith.divf %162, %163 : vector<16x1xf32>
    %165 = vector.broadcast %164 : vector<16x1xf32> to vector<16x32xf32>
    %166 = arith.subf %160, %165 : vector<16x32xf32>
    %167 = arith.mulf %166, %166 : vector<16x32xf32>
    %cst_46 = arith.constant dense<0.000000e+00> : vector<16xf32>
    %168 = vector.multi_reduction <add>, %167, %cst_46 [1] : vector<16x32xf32> to vector<16xf32>
    %169 = vector.shape_cast %168 : vector<16xf32> to vector<16x1xf32>
    %cst_47 = arith.constant 3.200000e+01 : f32
    %170 = vector.broadcast %cst_47 : f32 to vector<16x1xf32>
    %171 = arith.divf %169, %170 : vector<16x1xf32>
    %cst_48 = arith.constant 9.99999974E-6 : f32
    %172 = vector.broadcast %cst_48 : f32 to vector<16x1xf32>
    %173 = arith.addf %171, %172 : vector<16x1xf32>
    %174 = math.rsqrt %173 : vector<16x1xf32>
    %175 = vector.broadcast %174 : vector<16x1xf32> to vector<16x32xf32>
    %176 = arith.mulf %166, %175 : vector<16x32xf32>
    %c0_49 = arith.constant 0 : index
    %c0_50 = arith.constant 0 : index
    %177 = vector.load %arg17[%c0_49, %c0_50] : memref<1x32xf32, #tpu.memory_space<vmem>>, vector<1x32xf32>
    %178 = vector.broadcast %177 : vector<1x32xf32> to vector<16x32xf32>
    %179 = arith.mulf %176, %178 : vector<16x32xf32>
    %c0_51 = arith.constant 0 : index
    %c0_52 = arith.constant 0 : index
    %180 = vector.load %arg18[%c0_51, %c0_52] : memref<1x32xf32, #tpu.memory_space<vmem>>, vector<1x32xf32>
    %181 = vector.broadcast %180 : vector<1x32xf32> to vector<16x32xf32>
    %182 = arith.addf %179, %181 : vector<16x32xf32>
    %183 = arith.truncf %182 : vector<16x32xf32> to vector<16x32xbf16>
    %c0_53 = arith.constant 0 : index
    %c0_54 = arith.constant 0 : index
    %184 = vector.load %arg7[%c0_53, %c0_54] : memref<32x32xbf16, #tpu.memory_space<vmem>>, vector<32x32xbf16>
    %cst_55 = arith.constant dense<0.000000e+00> : vector<16x32xf32>
    %185 = tpu.matmul %183, %184, %cst_55 {dimension_numbers = #tpu.dot_dimension_numbers<[1], [1], [0], [0], [0, 0, 1, 0], [], []>} : vector<16x32xbf16>, vector<32x32xbf16>, vector<16x32xf32> -> vector<16x32xf32>
    %c0_56 = arith.constant 0 : index
    %c0_57 = arith.constant 0 : index
    %186 = vector.load %arg8[%c0_56, %c0_57] : memref<1x32xf32, #tpu.memory_space<vmem>>, vector<1x32xf32>
    %187 = vector.broadcast %186 : vector<1x32xf32> to vector<16x32xf32>
    %188 = arith.addf %185, %187 : vector<16x32xf32>
    %189 = arith.truncf %1 : vector<16x32xf32> to vector<16x32xbf16>
    %c0_58 = arith.constant 0 : index
    %c0_59 = arith.constant 0 : index
    %190 = vector.load %arg9[%c0_58, %c0_59] : memref<64x32xbf16, #tpu.memory_space<vmem>>, vector<64x32xbf16>
    %cst_60 = arith.constant dense<0.000000e+00> : vector<16x64xf32>
    %191 = tpu.matmul %189, %190, %cst_60 {dimension_numbers = #tpu.dot_dimension_numbers<[1], [1], [0], [0], [0, 0, 1, 0], [], []>} : vector<16x32xbf16>, vector<64x32xbf16>, vector<16x64xf32> -> vector<16x64xf32>
    %c0_61 = arith.constant 0 : index
    %c0_62 = arith.constant 0 : index
    %192 = vector.load %arg10[%c0_61, %c0_62] : memref<1x64xf32, #tpu.memory_space<vmem>>, vector<1x64xf32>
    %193 = vector.broadcast %192 : vector<1x64xf32> to vector<16x64xf32>
    %194 = arith.addf %191, %193 : vector<16x64xf32>
    %195 = vector.extract_strided_slice %194 {offsets = [0, 0], sizes = [16, 32], strides = [1, 1]} : vector<16x64xf32> to vector<16x32xf32>
    %196 = vector.extract_strided_slice %194 {offsets = [0, 32], sizes = [16, 32], strides = [1, 1]} : vector<16x64xf32> to vector<16x32xf32>
    %197 = vector.extract_strided_slice %188 {offsets = [0, 0], sizes = [8, 32], strides = [1, 1]} : vector<16x32xf32> to vector<8x32xf32>
    %198 = arith.truncf %197 : vector<8x32xf32> to vector<8x32xbf16>
    %199 = vector.extract_strided_slice %195 {offsets = [0, 0], sizes = [8, 32], strides = [1, 1]} : vector<16x32xf32> to vector<8x32xf32>
    %200 = arith.truncf %199 : vector<8x32xf32> to vector<8x32xbf16>
    %201 = vector.extract_strided_slice %196 {offsets = [0, 0], sizes = [8, 32], strides = [1, 1]} : vector<16x32xf32> to vector<8x32xf32>
    %202 = arith.truncf %201 : vector<8x32xf32> to vector<8x32xbf16>
    %203 = vector.extract_strided_slice %198 {offsets = [0, 0], sizes = [8, 8], strides = [1, 1]} : vector<8x32xbf16> to vector<8x8xbf16>
    %204 = vector.extract_strided_slice %200 {offsets = [0, 0], sizes = [8, 8], strides = [1, 1]} : vector<8x32xbf16> to vector<8x8xbf16>
    %cst_63 = arith.constant dense<0.000000e+00> : vector<8x8xf32>
    %205 = tpu.matmul %203, %204, %cst_63 {dimension_numbers = #tpu.dot_dimension_numbers<[1], [1], [0], [0], [0, 0, 1, 0], [], []>} : vector<8x8xbf16>, vector<8x8xbf16>, vector<8x8xf32> -> vector<8x8xf32>
    %cst_64 = arith.constant dense<0xFF800000> : vector<8xf32>
    %206 = vector.multi_reduction <maximumf>, %205, %cst_64 [1] : vector<8x8xf32> to vector<8xf32>
    %207 = vector.shape_cast %206 : vector<8xf32> to vector<8x1xf32>
    %208 = vector.broadcast %207 : vector<8x1xf32> to vector<8x8xf32>
    %209 = arith.subf %205, %208 : vector<8x8xf32>
    %210 = math.exp %209 : vector<8x8xf32>
    %cst_65 = arith.constant dense<0.000000e+00> : vector<8xf32>
    %211 = vector.multi_reduction <add>, %210, %cst_65 [1] : vector<8x8xf32> to vector<8xf32>
    %212 = vector.shape_cast %211 : vector<8xf32> to vector<8x1xf32>
    %213 = arith.truncf %210 : vector<8x8xf32> to vector<8x8xbf16>
    %214 = vector.extract_strided_slice %202 {offsets = [0, 0], sizes = [8, 8], strides = [1, 1]} : vector<8x32xbf16> to vector<8x8xbf16>
    %cst_66 = arith.constant dense<0.000000e+00> : vector<8x8xf32>
    %215 = tpu.matmul %213, %214, %cst_66 {dimension_numbers = #tpu.dot_dimension_numbers<[1], [0], [0], [1], [0, 0, 1, 1], [], []>} : vector<8x8xbf16>, vector<8x8xbf16>, vector<8x8xf32> -> vector<8x8xf32>
    %216 = tpu.reciprocal %212 {approx = true} : vector<8x1xf32> -> vector<8x1xf32>
    %217 = vector.broadcast %216 : vector<8x1xf32> to vector<8x8xf32>
    %218 = arith.mulf %215, %217 : vector<8x8xf32>
    %219 = vector.extract_strided_slice %198 {offsets = [0, 8], sizes = [8, 8], strides = [1, 1]} : vector<8x32xbf16> to vector<8x8xbf16>
    %220 = vector.extract_strided_slice %200 {offsets = [0, 8], sizes = [8, 8], strides = [1, 1]} : vector<8x32xbf16> to vector<8x8xbf16>
    %cst_67 = arith.constant dense<0.000000e+00> : vector<8x8xf32>
    %221 = tpu.matmul %219, %220, %cst_67 {dimension_numbers = #tpu.dot_dimension_numbers<[1], [1], [0], [0], [0, 0, 1, 0], [], []>} : vector<8x8xbf16>, vector<8x8xbf16>, vector<8x8xf32> -> vector<8x8xf32>
    %cst_68 = arith.constant dense<0xFF800000> : vector<8xf32>
    %222 = vector.multi_reduction <maximumf>, %221, %cst_68 [1] : vector<8x8xf32> to vector<8xf32>
    %223 = vector.shape_cast %222 : vector<8xf32> to vector<8x1xf32>
    %224 = vector.broadcast %223 : vector<8x1xf32> to vector<8x8xf32>
    %225 = arith.subf %221, %224 : vector<8x8xf32>
    %226 = math.exp %225 : vector<8x8xf32>
    %cst_69 = arith.constant dense<0.000000e+00> : vector<8xf32>
    %227 = vector.multi_reduction <add>, %226, %cst_69 [1] : vector<8x8xf32> to vector<8xf32>
    %228 = vector.shape_cast %227 : vector<8xf32> to vector<8x1xf32>
    %229 = arith.truncf %226 : vector<8x8xf32> to vector<8x8xbf16>
    %230 = vector.extract_strided_slice %202 {offsets = [0, 8], sizes = [8, 8], strides = [1, 1]} : vector<8x32xbf16> to vector<8x8xbf16>
    %cst_70 = arith.constant dense<0.000000e+00> : vector<8x8xf32>
    %231 = tpu.matmul %229, %230, %cst_70 {dimension_numbers = #tpu.dot_dimension_numbers<[1], [0], [0], [1], [0, 0, 1, 1], [], []>} : vector<8x8xbf16>, vector<8x8xbf16>, vector<8x8xf32> -> vector<8x8xf32>
    %232 = tpu.reciprocal %228 {approx = true} : vector<8x1xf32> -> vector<8x1xf32>
    %233 = vector.broadcast %232 : vector<8x1xf32> to vector<8x8xf32>
    %234 = arith.mulf %231, %233 : vector<8x8xf32>
    %235 = vector.extract_strided_slice %198 {offsets = [0, 16], sizes = [8, 8], strides = [1, 1]} : vector<8x32xbf16> to vector<8x8xbf16>
    %236 = vector.extract_strided_slice %200 {offsets = [0, 16], sizes = [8, 8], strides = [1, 1]} : vector<8x32xbf16> to vector<8x8xbf16>
    %cst_71 = arith.constant dense<0.000000e+00> : vector<8x8xf32>
    %237 = tpu.matmul %235, %236, %cst_71 {dimension_numbers = #tpu.dot_dimension_numbers<[1], [1], [0], [0], [0, 0, 1, 0], [], []>} : vector<8x8xbf16>, vector<8x8xbf16>, vector<8x8xf32> -> vector<8x8xf32>
    %cst_72 = arith.constant dense<0xFF800000> : vector<8xf32>
    %238 = vector.multi_reduction <maximumf>, %237, %cst_72 [1] : vector<8x8xf32> to vector<8xf32>
    %239 = vector.shape_cast %238 : vector<8xf32> to vector<8x1xf32>
    %240 = vector.broadcast %239 : vector<8x1xf32> to vector<8x8xf32>
    %241 = arith.subf %237, %240 : vector<8x8xf32>
    %242 = math.exp %241 : vector<8x8xf32>
    %cst_73 = arith.constant dense<0.000000e+00> : vector<8xf32>
    %243 = vector.multi_reduction <add>, %242, %cst_73 [1] : vector<8x8xf32> to vector<8xf32>
    %244 = vector.shape_cast %243 : vector<8xf32> to vector<8x1xf32>
    %245 = arith.truncf %242 : vector<8x8xf32> to vector<8x8xbf16>
    %246 = vector.extract_strided_slice %202 {offsets = [0, 16], sizes = [8, 8], strides = [1, 1]} : vector<8x32xbf16> to vector<8x8xbf16>
    %cst_74 = arith.constant dense<0.000000e+00> : vector<8x8xf32>
    %247 = tpu.matmul %245, %246, %cst_74 {dimension_numbers = #tpu.dot_dimension_numbers<[1], [0], [0], [1], [0, 0, 1, 1], [], []>} : vector<8x8xbf16>, vector<8x8xbf16>, vector<8x8xf32> -> vector<8x8xf32>
    %248 = tpu.reciprocal %244 {approx = true} : vector<8x1xf32> -> vector<8x1xf32>
    %249 = vector.broadcast %248 : vector<8x1xf32> to vector<8x8xf32>
    %250 = arith.mulf %247, %249 : vector<8x8xf32>
    %251 = vector.extract_strided_slice %198 {offsets = [0, 24], sizes = [8, 8], strides = [1, 1]} : vector<8x32xbf16> to vector<8x8xbf16>
    %252 = vector.extract_strided_slice %200 {offsets = [0, 24], sizes = [8, 8], strides = [1, 1]} : vector<8x32xbf16> to vector<8x8xbf16>
    %cst_75 = arith.constant dense<0.000000e+00> : vector<8x8xf32>
    %253 = tpu.matmul %251, %252, %cst_75 {dimension_numbers = #tpu.dot_dimension_numbers<[1], [1], [0], [0], [0, 0, 1, 0], [], []>} : vector<8x8xbf16>, vector<8x8xbf16>, vector<8x8xf32> -> vector<8x8xf32>
    %cst_76 = arith.constant dense<0xFF800000> : vector<8xf32>
    %254 = vector.multi_reduction <maximumf>, %253, %cst_76 [1] : vector<8x8xf32> to vector<8xf32>
    %255 = vector.shape_cast %254 : vector<8xf32> to vector<8x1xf32>
    %256 = vector.broadcast %255 : vector<8x1xf32> to vector<8x8xf32>
    %257 = arith.subf %253, %256 : vector<8x8xf32>
    %258 = math.exp %257 : vector<8x8xf32>
    %cst_77 = arith.constant dense<0.000000e+00> : vector<8xf32>
    %259 = vector.multi_reduction <add>, %258, %cst_77 [1] : vector<8x8xf32> to vector<8xf32>
    %260 = vector.shape_cast %259 : vector<8xf32> to vector<8x1xf32>
    %261 = arith.truncf %258 : vector<8x8xf32> to vector<8x8xbf16>
    %262 = vector.extract_strided_slice %202 {offsets = [0, 24], sizes = [8, 8], strides = [1, 1]} : vector<8x32xbf16> to vector<8x8xbf16>
    %cst_78 = arith.constant dense<0.000000e+00> : vector<8x8xf32>
    %263 = tpu.matmul %261, %262, %cst_78 {dimension_numbers = #tpu.dot_dimension_numbers<[1], [0], [0], [1], [0, 0, 1, 1], [], []>} : vector<8x8xbf16>, vector<8x8xbf16>, vector<8x8xf32> -> vector<8x8xf32>
    %264 = tpu.reciprocal %260 {approx = true} : vector<8x1xf32> -> vector<8x1xf32>
    %265 = vector.broadcast %264 : vector<8x1xf32> to vector<8x8xf32>
    %266 = arith.mulf %263, %265 : vector<8x8xf32>
    %267 = tpu.concatenate %218, %234, %250, %266 in 1 : vector<8x8xf32>, vector<8x8xf32>, vector<8x8xf32>, vector<8x8xf32> -> vector<8x32xf32>
    %268 = vector.extract_strided_slice %188 {offsets = [8, 0], sizes = [8, 32], strides = [1, 1]} : vector<16x32xf32> to vector<8x32xf32>
    %269 = arith.truncf %268 : vector<8x32xf32> to vector<8x32xbf16>
    %270 = vector.extract_strided_slice %195 {offsets = [8, 0], sizes = [8, 32], strides = [1, 1]} : vector<16x32xf32> to vector<8x32xf32>
    %271 = arith.truncf %270 : vector<8x32xf32> to vector<8x32xbf16>
    %272 = vector.extract_strided_slice %196 {offsets = [8, 0], sizes = [8, 32], strides = [1, 1]} : vector<16x32xf32> to vector<8x32xf32>
    %273 = arith.truncf %272 : vector<8x32xf32> to vector<8x32xbf16>
    %274 = vector.extract_strided_slice %269 {offsets = [0, 0], sizes = [8, 8], strides = [1, 1]} : vector<8x32xbf16> to vector<8x8xbf16>
    %275 = vector.extract_strided_slice %271 {offsets = [0, 0], sizes = [8, 8], strides = [1, 1]} : vector<8x32xbf16> to vector<8x8xbf16>
    %cst_79 = arith.constant dense<0.000000e+00> : vector<8x8xf32>
    %276 = tpu.matmul %274, %275, %cst_79 {dimension_numbers = #tpu.dot_dimension_numbers<[1], [1], [0], [0], [0, 0, 1, 0], [], []>} : vector<8x8xbf16>, vector<8x8xbf16>, vector<8x8xf32> -> vector<8x8xf32>
    %cst_80 = arith.constant dense<0xFF800000> : vector<8xf32>
    %277 = vector.multi_reduction <maximumf>, %276, %cst_80 [1] : vector<8x8xf32> to vector<8xf32>
    %278 = vector.shape_cast %277 : vector<8xf32> to vector<8x1xf32>
    %279 = vector.broadcast %278 : vector<8x1xf32> to vector<8x8xf32>
    %280 = arith.subf %276, %279 : vector<8x8xf32>
    %281 = math.exp %280 : vector<8x8xf32>
    %cst_81 = arith.constant dense<0.000000e+00> : vector<8xf32>
    %282 = vector.multi_reduction <add>, %281, %cst_81 [1] : vector<8x8xf32> to vector<8xf32>
    %283 = vector.shape_cast %282 : vector<8xf32> to vector<8x1xf32>
    %284 = arith.truncf %281 : vector<8x8xf32> to vector<8x8xbf16>
    %285 = vector.extract_strided_slice %273 {offsets = [0, 0], sizes = [8, 8], strides = [1, 1]} : vector<8x32xbf16> to vector<8x8xbf16>
    %cst_82 = arith.constant dense<0.000000e+00> : vector<8x8xf32>
    %286 = tpu.matmul %284, %285, %cst_82 {dimension_numbers = #tpu.dot_dimension_numbers<[1], [0], [0], [1], [0, 0, 1, 1], [], []>} : vector<8x8xbf16>, vector<8x8xbf16>, vector<8x8xf32> -> vector<8x8xf32>
    %287 = tpu.reciprocal %283 {approx = true} : vector<8x1xf32> -> vector<8x1xf32>
    %288 = vector.broadcast %287 : vector<8x1xf32> to vector<8x8xf32>
    %289 = arith.mulf %286, %288 : vector<8x8xf32>
    %290 = vector.extract_strided_slice %269 {offsets = [0, 8], sizes = [8, 8], strides = [1, 1]} : vector<8x32xbf16> to vector<8x8xbf16>
    %291 = vector.extract_strided_slice %271 {offsets = [0, 8], sizes = [8, 8], strides = [1, 1]} : vector<8x32xbf16> to vector<8x8xbf16>
    %cst_83 = arith.constant dense<0.000000e+00> : vector<8x8xf32>
    %292 = tpu.matmul %290, %291, %cst_83 {dimension_numbers = #tpu.dot_dimension_numbers<[1], [1], [0], [0], [0, 0, 1, 0], [], []>} : vector<8x8xbf16>, vector<8x8xbf16>, vector<8x8xf32> -> vector<8x8xf32>
    %cst_84 = arith.constant dense<0xFF800000> : vector<8xf32>
    %293 = vector.multi_reduction <maximumf>, %292, %cst_84 [1] : vector<8x8xf32> to vector<8xf32>
    %294 = vector.shape_cast %293 : vector<8xf32> to vector<8x1xf32>
    %295 = vector.broadcast %294 : vector<8x1xf32> to vector<8x8xf32>
    %296 = arith.subf %292, %295 : vector<8x8xf32>
    %297 = math.exp %296 : vector<8x8xf32>
    %cst_85 = arith.constant dense<0.000000e+00> : vector<8xf32>
    %298 = vector.multi_reduction <add>, %297, %cst_85 [1] : vector<8x8xf32> to vector<8xf32>
    %299 = vector.shape_cast %298 : vector<8xf32> to vector<8x1xf32>
    %300 = arith.truncf %297 : vector<8x8xf32> to vector<8x8xbf16>
    %301 = vector.extract_strided_slice %273 {offsets = [0, 8], sizes = [8, 8], strides = [1, 1]} : vector<8x32xbf16> to vector<8x8xbf16>
    %cst_86 = arith.constant dense<0.000000e+00> : vector<8x8xf32>
    %302 = tpu.matmul %300, %301, %cst_86 {dimension_numbers = #tpu.dot_dimension_numbers<[1], [0], [0], [1], [0, 0, 1, 1], [], []>} : vector<8x8xbf16>, vector<8x8xbf16>, vector<8x8xf32> -> vector<8x8xf32>
    %303 = tpu.reciprocal %299 {approx = true} : vector<8x1xf32> -> vector<8x1xf32>
    %304 = vector.broadcast %303 : vector<8x1xf32> to vector<8x8xf32>
    %305 = arith.mulf %302, %304 : vector<8x8xf32>
    %306 = vector.extract_strided_slice %269 {offsets = [0, 16], sizes = [8, 8], strides = [1, 1]} : vector<8x32xbf16> to vector<8x8xbf16>
    %307 = vector.extract_strided_slice %271 {offsets = [0, 16], sizes = [8, 8], strides = [1, 1]} : vector<8x32xbf16> to vector<8x8xbf16>
    %cst_87 = arith.constant dense<0.000000e+00> : vector<8x8xf32>
    %308 = tpu.matmul %306, %307, %cst_87 {dimension_numbers = #tpu.dot_dimension_numbers<[1], [1], [0], [0], [0, 0, 1, 0], [], []>} : vector<8x8xbf16>, vector<8x8xbf16>, vector<8x8xf32> -> vector<8x8xf32>
    %cst_88 = arith.constant dense<0xFF800000> : vector<8xf32>
    %309 = vector.multi_reduction <maximumf>, %308, %cst_88 [1] : vector<8x8xf32> to vector<8xf32>
    %310 = vector.shape_cast %309 : vector<8xf32> to vector<8x1xf32>
    %311 = vector.broadcast %310 : vector<8x1xf32> to vector<8x8xf32>
    %312 = arith.subf %308, %311 : vector<8x8xf32>
    %313 = math.exp %312 : vector<8x8xf32>
    %cst_89 = arith.constant dense<0.000000e+00> : vector<8xf32>
    %314 = vector.multi_reduction <add>, %313, %cst_89 [1] : vector<8x8xf32> to vector<8xf32>
    %315 = vector.shape_cast %314 : vector<8xf32> to vector<8x1xf32>
    %316 = arith.truncf %313 : vector<8x8xf32> to vector<8x8xbf16>
    %317 = vector.extract_strided_slice %273 {offsets = [0, 16], sizes = [8, 8], strides = [1, 1]} : vector<8x32xbf16> to vector<8x8xbf16>
    %cst_90 = arith.constant dense<0.000000e+00> : vector<8x8xf32>
    %318 = tpu.matmul %316, %317, %cst_90 {dimension_numbers = #tpu.dot_dimension_numbers<[1], [0], [0], [1], [0, 0, 1, 1], [], []>} : vector<8x8xbf16>, vector<8x8xbf16>, vector<8x8xf32> -> vector<8x8xf32>
    %319 = tpu.reciprocal %315 {approx = true} : vector<8x1xf32> -> vector<8x1xf32>
    %320 = vector.broadcast %319 : vector<8x1xf32> to vector<8x8xf32>
    %321 = arith.mulf %318, %320 : vector<8x8xf32>
    %322 = vector.extract_strided_slice %269 {offsets = [0, 24], sizes = [8, 8], strides = [1, 1]} : vector<8x32xbf16> to vector<8x8xbf16>
    %323 = vector.extract_strided_slice %271 {offsets = [0, 24], sizes = [8, 8], strides = [1, 1]} : vector<8x32xbf16> to vector<8x8xbf16>
    %cst_91 = arith.constant dense<0.000000e+00> : vector<8x8xf32>
    %324 = tpu.matmul %322, %323, %cst_91 {dimension_numbers = #tpu.dot_dimension_numbers<[1], [1], [0], [0], [0, 0, 1, 0], [], []>} : vector<8x8xbf16>, vector<8x8xbf16>, vector<8x8xf32> -> vector<8x8xf32>
    %cst_92 = arith.constant dense<0xFF800000> : vector<8xf32>
    %325 = vector.multi_reduction <maximumf>, %324, %cst_92 [1] : vector<8x8xf32> to vector<8xf32>
    %326 = vector.shape_cast %325 : vector<8xf32> to vector<8x1xf32>
    %327 = vector.broadcast %326 : vector<8x1xf32> to vector<8x8xf32>
    %328 = arith.subf %324, %327 : vector<8x8xf32>
    %329 = math.exp %328 : vector<8x8xf32>
    %cst_93 = arith.constant dense<0.000000e+00> : vector<8xf32>
    %330 = vector.multi_reduction <add>, %329, %cst_93 [1] : vector<8x8xf32> to vector<8xf32>
    %331 = vector.shape_cast %330 : vector<8xf32> to vector<8x1xf32>
    %332 = arith.truncf %329 : vector<8x8xf32> to vector<8x8xbf16>
    %333 = vector.extract_strided_slice %273 {offsets = [0, 24], sizes = [8, 8], strides = [1, 1]} : vector<8x32xbf16> to vector<8x8xbf16>
    %cst_94 = arith.constant dense<0.000000e+00> : vector<8x8xf32>
    %334 = tpu.matmul %332, %333, %cst_94 {dimension_numbers = #tpu.dot_dimension_numbers<[1], [0], [0], [1], [0, 0, 1, 1], [], []>} : vector<8x8xbf16>, vector<8x8xbf16>, vector<8x8xf32> -> vector<8x8xf32>
    %335 = tpu.reciprocal %331 {approx = true} : vector<8x1xf32> -> vector<8x1xf32>
    %336 = vector.broadcast %335 : vector<8x1xf32> to vector<8x8xf32>
    %337 = arith.mulf %334, %336 : vector<8x8xf32>
    %338 = tpu.concatenate %289, %305, %321, %337 in 1 : vector<8x8xf32>, vector<8x8xf32>, vector<8x8xf32>, vector<8x8xf32> -> vector<8x32xf32>
    %339 = tpu.concatenate %267, %338 in 0 : vector<8x32xf32>, vector<8x32xf32> -> vector<16x32xf32>
    %340 = arith.truncf %339 : vector<16x32xf32> to vector<16x32xbf16>
    %c0_95 = arith.constant 0 : index
    %c0_96 = arith.constant 0 : index
    %341 = vector.load %arg11[%c0_95, %c0_96] : memref<32x32xbf16, #tpu.memory_space<vmem>>, vector<32x32xbf16>
    %cst_97 = arith.constant dense<0.000000e+00> : vector<16x32xf32>
    %342 = tpu.matmul %340, %341, %cst_97 {dimension_numbers = #tpu.dot_dimension_numbers<[1], [1], [0], [0], [0, 0, 1, 0], [], []>} : vector<16x32xbf16>, vector<32x32xbf16>, vector<16x32xf32> -> vector<16x32xf32>
    %c0_98 = arith.constant 0 : index
    %c0_99 = arith.constant 0 : index
    %343 = vector.load %arg12[%c0_98, %c0_99] : memref<1x32xf32, #tpu.memory_space<vmem>>, vector<1x32xf32>
    %344 = vector.broadcast %343 : vector<1x32xf32> to vector<16x32xf32>
    %345 = arith.addf %342, %344 : vector<16x32xf32>
    %346 = arith.addf %182, %345 : vector<16x32xf32>
    %cst_100 = arith.constant dense<0.000000e+00> : vector<16xf32>
    %347 = vector.multi_reduction <add>, %346, %cst_100 [1] : vector<16x32xf32> to vector<16xf32>
    %348 = vector.shape_cast %347 : vector<16xf32> to vector<16x1xf32>
    %cst_101 = arith.constant 3.200000e+01 : f32
    %349 = vector.broadcast %cst_101 : f32 to vector<16x1xf32>
    %350 = arith.divf %348, %349 : vector<16x1xf32>
    %351 = vector.broadcast %350 : vector<16x1xf32> to vector<16x32xf32>
    %352 = arith.subf %346, %351 : vector<16x32xf32>
    %353 = arith.mulf %352, %352 : vector<16x32xf32>
    %cst_102 = arith.constant dense<0.000000e+00> : vector<16xf32>
    %354 = vector.multi_reduction <add>, %353, %cst_102 [1] : vector<16x32xf32> to vector<16xf32>
    %355 = vector.shape_cast %354 : vector<16xf32> to vector<16x1xf32>
    %cst_103 = arith.constant 3.200000e+01 : f32
    %356 = vector.broadcast %cst_103 : f32 to vector<16x1xf32>
    %357 = arith.divf %355, %356 : vector<16x1xf32>
    %cst_104 = arith.constant 9.99999974E-6 : f32
    %358 = vector.broadcast %cst_104 : f32 to vector<16x1xf32>
    %359 = arith.addf %357, %358 : vector<16x1xf32>
    %360 = math.rsqrt %359 : vector<16x1xf32>
    %361 = vector.broadcast %360 : vector<16x1xf32> to vector<16x32xf32>
    %362 = arith.mulf %352, %361 : vector<16x32xf32>
    %c0_105 = arith.constant 0 : index
    %c0_106 = arith.constant 0 : index
    %363 = vector.load %arg19[%c0_105, %c0_106] : memref<1x32xf32, #tpu.memory_space<vmem>>, vector<1x32xf32>
    %364 = vector.broadcast %363 : vector<1x32xf32> to vector<16x32xf32>
    %365 = arith.mulf %362, %364 : vector<16x32xf32>
    %c0_107 = arith.constant 0 : index
    %c0_108 = arith.constant 0 : index
    %366 = vector.load %arg20[%c0_107, %c0_108] : memref<1x32xf32, #tpu.memory_space<vmem>>, vector<1x32xf32>
    %367 = vector.broadcast %366 : vector<1x32xf32> to vector<16x32xf32>
    %368 = arith.addf %365, %367 : vector<16x32xf32>
    %369 = arith.truncf %368 : vector<16x32xf32> to vector<16x32xbf16>
    %c0_109 = arith.constant 0 : index
    %c0_110 = arith.constant 0 : index
    %370 = vector.load %arg13[%c0_109, %c0_110] : memref<64x32xbf16, #tpu.memory_space<vmem>>, vector<64x32xbf16>
    %cst_111 = arith.constant dense<0.000000e+00> : vector<16x64xf32>
    %371 = tpu.matmul %369, %370, %cst_111 {dimension_numbers = #tpu.dot_dimension_numbers<[1], [1], [0], [0], [0, 0, 1, 0], [], []>} : vector<16x32xbf16>, vector<64x32xbf16>, vector<16x64xf32> -> vector<16x64xf32>
    %c0_112 = arith.constant 0 : index
    %c0_113 = arith.constant 0 : index
    %372 = vector.load %arg14[%c0_112, %c0_113] : memref<1x64xf32, #tpu.memory_space<vmem>>, vector<1x64xf32>
    %373 = vector.broadcast %372 : vector<1x64xf32> to vector<16x64xf32>
    %374 = arith.addf %371, %373 : vector<16x64xf32>
    %cst_114 = arith.constant 0.000000e+00 : f32
    %375 = vector.broadcast %cst_114 : f32 to vector<16x64xf32>
    %376 = arith.maximumf %374, %375 : vector<16x64xf32>
    %377 = arith.truncf %376 : vector<16x64xf32> to vector<16x64xbf16>
    %c0_115 = arith.constant 0 : index
    %c0_116 = arith.constant 0 : index
    %378 = vector.load %arg15[%c0_115, %c0_116] : memref<32x64xbf16, #tpu.memory_space<vmem>>, vector<32x64xbf16>
    %cst_117 = arith.constant dense<0.000000e+00> : vector<16x32xf32>
    %379 = tpu.matmul %377, %378, %cst_117 {dimension_numbers = #tpu.dot_dimension_numbers<[1], [1], [0], [0], [0, 0, 1, 0], [], []>} : vector<16x64xbf16>, vector<32x64xbf16>, vector<16x32xf32> -> vector<16x32xf32>
    %c0_118 = arith.constant 0 : index
    %c0_119 = arith.constant 0 : index
    %380 = vector.load %arg16[%c0_118, %c0_119] : memref<1x32xf32, #tpu.memory_space<vmem>>, vector<1x32xf32>
    %381 = vector.broadcast %380 : vector<1x32xf32> to vector<16x32xf32>
    %382 = arith.addf %379, %381 : vector<16x32xf32>
    %383 = arith.addf %368, %382 : vector<16x32xf32>
    %cst_120 = arith.constant dense<0.000000e+00> : vector<16xf32>
    %384 = vector.multi_reduction <add>, %383, %cst_120 [1] : vector<16x32xf32> to vector<16xf32>
    %385 = vector.shape_cast %384 : vector<16xf32> to vector<16x1xf32>
    %cst_121 = arith.constant 3.200000e+01 : f32
    %386 = vector.broadcast %cst_121 : f32 to vector<16x1xf32>
    %387 = arith.divf %385, %386 : vector<16x1xf32>
    %388 = vector.broadcast %387 : vector<16x1xf32> to vector<16x32xf32>
    %389 = arith.subf %383, %388 : vector<16x32xf32>
    %390 = arith.mulf %389, %389 : vector<16x32xf32>
    %cst_122 = arith.constant dense<0.000000e+00> : vector<16xf32>
    %391 = vector.multi_reduction <add>, %390, %cst_122 [1] : vector<16x32xf32> to vector<16xf32>
    %392 = vector.shape_cast %391 : vector<16xf32> to vector<16x1xf32>
    %cst_123 = arith.constant 3.200000e+01 : f32
    %393 = vector.broadcast %cst_123 : f32 to vector<16x1xf32>
    %394 = arith.divf %392, %393 : vector<16x1xf32>
    %cst_124 = arith.constant 9.99999974E-6 : f32
    %395 = vector.broadcast %cst_124 : f32 to vector<16x1xf32>
    %396 = arith.addf %394, %395 : vector<16x1xf32>
    %397 = math.rsqrt %396 : vector<16x1xf32>
    %398 = vector.broadcast %397 : vector<16x1xf32> to vector<16x32xf32>
    %399 = arith.mulf %389, %398 : vector<16x32xf32>
    %c0_125 = arith.constant 0 : index
    %c0_126 = arith.constant 0 : index
    %400 = vector.load %arg21[%c0_125, %c0_126] : memref<1x32xf32, #tpu.memory_space<vmem>>, vector<1x32xf32>
    %401 = vector.broadcast %400 : vector<1x32xf32> to vector<16x32xf32>
    %402 = arith.mulf %399, %401 : vector<16x32xf32>
    %c0_127 = arith.constant 0 : index
    %c0_128 = arith.constant 0 : index
    %403 = vector.load %arg22[%c0_127, %c0_128] : memref<1x32xf32, #tpu.memory_space<vmem>>, vector<1x32xf32>
    %404 = vector.broadcast %403 : vector<1x32xf32> to vector<16x32xf32>
    %405 = arith.addf %402, %404 : vector<16x32xf32>
    %c0_129 = arith.constant 0 : index
    %c0_130 = arith.constant 0 : index
    %406 = vector.load %arg23[%c0_129, %c0_130] : memref<16x32xf32, #tpu.memory_space<vmem>>, vector<16x32xf32>
    tpu.vector_store %arg23[%c0_129, %c0_130], %405 {strides = array<i32>} : memref<16x32xf32, #tpu.memory_space<vmem>>, vector<16x32xf32>,
    return
  }
  func.func @transform_0(%arg0: i32) -> (i32, i32) {
    %c0_i32 = arith.constant 0 : i32
    %c0_i32_0 = arith.constant 0 : i32
    %c0_i32_1 = arith.constant 0 : i32
    return %c0_i32, %c0_i32_0 : i32, i32
  }
  func.func @transform_1(%arg0: i32) -> (i32, i32) {
    %c0_i32 = arith.constant 0 : i32
    %c0_i32_0 = arith.constant 0 : i32
    %c0_i32_1 = arith.constant 0 : i32
    return %c0_i32, %c0_i32_0 : i32, i32
  }
  func.func @transform_2(%arg0: i32) -> (i32, i32) {
    %c0_i32 = arith.constant 0 : i32
    %c0_i32_0 = arith.constant 0 : i32
    %c0_i32_1 = arith.constant 0 : i32
    return %c0_i32, %c0_i32_0 : i32, i32
  }
  func.func @transform_3(%arg0: i32) -> (i32, i32) {
    %c0_i32 = arith.constant 0 : i32
    %c0_i32_0 = arith.constant 0 : i32
    %c0_i32_1 = arith.constant 0 : i32
    return %c0_i32, %c0_i32_0 : i32, i32
  }
  func.func @transform_4(%arg0: i32) -> (i32, i32) {
    %c0_i32 = arith.constant 0 : i32
    %c0_i32_0 = arith.constant 0 : i32
    %c0_i32_1 = arith.constant 0 : i32
    return %c0_i32, %c0_i32_0 : i32, i32
  }
  func.func @transform_5(%arg0: i32) -> (i32, i32) {
    %c0_i32 = arith.constant 0 : i32
    %c0_i32_0 = arith.constant 0 : i32
    %c0_i32_1 = arith.constant 0 : i32
    return %c0_i32, %c0_i32_0 : i32, i32
  }
  func.func @transform_6(%arg0: i32) -> (i32, i32) {
    %c0_i32 = arith.constant 0 : i32
    %c0_i32_0 = arith.constant 0 : i32
    %c0_i32_1 = arith.constant 0 : i32
    return %c0_i32, %c0_i32_0 : i32, i32
  }
  func.func @transform_7(%arg0: i32) -> (i32, i32) {
    %c0_i32 = arith.constant 0 : i32
    %c0_i32_0 = arith.constant 0 : i32
    %c0_i32_1 = arith.constant 0 : i32
    return %c0_i32, %c0_i32_0 : i32, i32
  }
  func.func @transform_8(%arg0: i32) -> (i32, i32) {
    %c0_i32 = arith.constant 0 : i32
    %c0_i32_0 = arith.constant 0 : i32
    %c0_i32_1 = arith.constant 0 : i32
    return %c0_i32, %c0_i32_0 : i32, i32
  }
  func.func @transform_9(%arg0: i32) -> (i32, i32) {
    %c0_i32 = arith.constant 0 : i32
    %c0_i32_0 = arith.constant 0 : i32
    %c0_i32_1 = arith.constant 0 : i32
    return %c0_i32, %c0_i32_0 : i32, i32
  }
  func.func @transform_10(%arg0: i32) -> (i32, i32) {
    %c0_i32 = arith.constant 0 : i32
    %c0_i32_0 = arith.constant 0 : i32
    %c0_i32_1 = arith.constant 0 : i32
    return %c0_i32, %c0_i32_0 : i32, i32
  }
  func.func @transform_11(%arg0: i32) -> (i32, i32) {
    %c0_i32 = arith.constant 0 : i32
    %c0_i32_0 = arith.constant 0 : i32
    %c0_i32_1 = arith.constant 0 : i32
    return %c0_i32, %c0_i32_0 : i32, i32
  }
  func.func @transform_12(%arg0: i32) -> (i32, i32) {
    %c0_i32 = arith.constant 0 : i32
    %c0_i32_0 = arith.constant 0 : i32
    %c0_i32_1 = arith.constant 0 : i32
    return %c0_i32, %c0_i32_0 : i32, i32
  }
  func.func @transform_13(%arg0: i32) -> (i32, i32) {
    %c0_i32 = arith.constant 0 : i32
    %c0_i32_0 = arith.constant 0 : i32
    %c0_i32_1 = arith.constant 0 : i32
    return %c0_i32, %c0_i32_0 : i32, i32
  }
  func.func @transform_14(%arg0: i32) -> (i32, i32) {
    %c0_i32 = arith.constant 0 : i32
    %c0_i32_0 = arith.constant 0 : i32
    %c0_i32_1 = arith.constant 0 : i32
    return %c0_i32, %c0_i32_0 : i32, i32
  }
  func.func @transform_15(%arg0: i32) -> (i32, i32) {
    %c0_i32 = arith.constant 0 : i32
    %c0_i32_0 = arith.constant 0 : i32
    %c0_i32_1 = arith.constant 0 : i32
    return %c0_i32, %c0_i32_0 : i32, i32
  }
  func.func @transform_16(%arg0: i32) -> (i32, i32) {
    %c0_i32 = arith.constant 0 : i32
    %c0_i32_0 = arith.constant 0 : i32
    %c0_i32_1 = arith.constant 0 : i32
    return %c0_i32, %c0_i32_0 : i32, i32
  }
  func.func @transform_17(%arg0: i32) -> (i32, i32) {
    %c0_i32 = arith.constant 0 : i32
    %c0_i32_0 = arith.constant 0 : i32
    %c0_i32_1 = arith.constant 0 : i32
    return %c0_i32, %c0_i32_0 : i32, i32
  }
  func.func @transform_18(%arg0: i32) -> (i32, i32) {
    %c0_i32 = arith.constant 0 : i32
    %c0_i32_0 = arith.constant 0 : i32
    %c0_i32_1 = arith.constant 0 : i32
    return %c0_i32, %c0_i32_0 : i32, i32
  }
  func.func @transform_19(%arg0: i32) -> (i32, i32) {
    %c0_i32 = arith.constant 0 : i32
    %c0_i32_0 = arith.constant 0 : i32
    %c0_i32_1 = arith.constant 0 : i32
    return %c0_i32, %c0_i32_0 : i32, i32
  }
  func.func @transform_20(%arg0: i32) -> (i32, i32) {
    %c0_i32 = arith.constant 0 : i32
    %c0_i32_0 = arith.constant 0 : i32
    %c0_i32_1 = arith.constant 0 : i32
    return %c0_i32, %c0_i32_0 : i32, i32
  }
  func.func @transform_21(%arg0: i32) -> (i32, i32) {
    %c0_i32 = arith.constant 0 : i32
    %c0_i32_0 = arith.constant 0 : i32
    %c0_i32_1 = arith.constant 0 : i32
    return %c0_i32, %c0_i32_0 : i32, i32
  }
  func.func @transform_22(%arg0: i32) -> (i32, i32) {
    %c0_i32 = arith.constant 0 : i32
    %c0_i32_0 = arith.constant 0 : i32
    %c0_i32_1 = arith.constant 0 : i32
    return %c0_i32, %c0_i32_0 : i32, i32
  }
}

</mosaic_0001>

<bundles_post_ra>
// kernel: tpu_custom_call.1
= control target key start
LH: loop header
LB: loop body
LE: loop exit
PB: predicated region body
PF: predicated region fallthrough
CT: control target
= control target key end

     0   :  { %s2522_s0 = inlined_call_operand.vmem [shape: f32[16,32], index: 0, kind: input, shape index: {}]   ;;  %s2523_s1 = inlined_call_operand.vmem [shape: f32[16,32], index: 1, kind: input, shape index: {}]   ;;  %s2524_s2 = inlined_call_operand.vmem [shape: bf16[96,32], index: 2, kind: input, shape index: {}]   ;;  %s2525_s3 = inlined_call_operand.vmem [shape: f32[1,96], index: 3, kind: input, shape index: {}]   ;;  %s2526_s4 = inlined_call_operand.vmem [shape: bf16[32,32], index: 4, kind: input, shape index: {}]   ;;  %s2527_s5 = inlined_call_operand.vmem [shape: f32[1,32], index: 5, kind: input, shape index: {}]   ;;  %s2528_s6 = inlined_call_operand.vmem [shape: bf16[32,32], index: 6, kind: input, shape index: {}]   ;;  %s2529_s7 = inlined_call_operand.vmem [shape: f32[1,32], index: 7, kind: input, shape index: {}]   ;;  %s2530_s8 = inlined_call_operand.vmem [shape: bf16[64,32], index: 8, kind: input, shape index: {}]   ;;  %s2531_s9 = inlined_call_operand.vmem [shape: f32[1,64], index: 9, kind: input, shape index: {}]   ;;  %s2532_s10 = inlined_call_operand.vmem [shape: bf16[32,32], index: 10, kind: input, shape index: {}]   ;;  %s2533_s11 = inlined_call_operand.vmem [shape: f32[1,32], index: 11, kind: input, shape index: {}]   ;;  %s2534_s12 = inlined_call_operand.vmem [shape: bf16[64,32], index: 12, kind: input, shape index: {}]   ;;  %s2535_s13 = inlined_call_operand.vmem [shape: f32[1,64], index: 13, kind: input, shape index: {}]   ;;  %s2536_s14 = inlined_call_operand.vmem [shape: bf16[32,64], index: 14, kind: input, shape index: {}]   ;;  %s2537_s15 = inlined_call_operand.vmem [shape: f32[1,32], index: 15, kind: input, shape index: {}]   ;;  %s2538_s16 = inlined_call_operand.vmem [shape: f32[1,32], index: 16, kind: input, shape index: {}]   ;;  %s2539_s17 = inlined_call_operand.vmem [shape: f32[1,32], index: 17, kind: input, shape index: {}]   ;;  %s2540_s18 = inlined_call_operand.vmem [shape: f32[1,32], index: 18, kind: input, shape index: {}]   ;;  %s2541_s19 = inlined_call_operand.vmem [shape: f32[1,32], index: 19, kind: input, shape index: {}]   ;;  %s2542_s20 = inlined_call_operand.vmem [shape: f32[1,32], index: 20, kind: input, shape index: {}]   ;;  %s2543_s21 = inlined_call_operand.vmem [shape: f32[1,32], index: 21, kind: input, shape index: {}]   ;;  %s2544_s22 = inlined_call_operand.hbm [shape: f32[16,32], index: 22, kind: output, shape index: {}]  }
   0x1   :  { %2558 = sst [smem:[#allocation5_spill]] %s2522_s0 }
   0x2   :  { %2559 = sst [smem:[#allocation6_spill]] %s2523_s1 }
   0x3   :  { %2560 = sst [smem:[#allocation7_spill]] %s2524_s2 }
   0x4   :  { %2561 = sst [smem:[#allocation8_spill]] %s2525_s3 }
   0x5   :  { %2562 = sst [smem:[#allocation9_spill]] %s2526_s4 }
   0x6   :  { %2563 = sst [smem:[#allocation10_spill]] %s2527_s5 }
   0x7   :  { %2564 = sst [smem:[#allocation11_spill]] %s2528_s6 }
   0x8   :  { %s2565_s29 = sld [smem:[#allocation7_spill]]  ;;  %vm124_vm0 = vcmask 261120  }
   0xe   :  { %v1760_v0 = vld [vmem:[%s2565_s29 + $0x28] sm:$0xff]  ;;  %v1759_v2 = vld [vmem:[%s2565_s29 + $0x20] sm:$0xff] }
   0xf   :  { %v144_v1 = vsel %vm124_vm0, %v1760_v0, 0 }
  0x10   :  { %148 = vmatpush.bf16.xpose.msra.mxu0 %v144_v1 }
  0x11   :  { %27 = vsyncpa [#allocation3], 0  ;;  %v141_v3 = vsel %vm124_vm0, %v1759_v2, 0  ;;  %v1758_v4 = vld [vmem:[%s2565_s29 + $0x18] sm:$0xff]  ;;  %v1757_v6 = vld [vmem:[%s2565_s29 + $0x10] sm:$0xff]  ;;  %s2566_s3 = sld [smem:[#allocation5_spill]] }
  0x12   :  { %v138_v5 = vsel %vm124_vm0, %v1758_v4, 0  ;;  %v135_v7 = vsel %vm124_vm0, %v1757_v6, 0  ;;  %v1756_v8 = vld [vmem:[%s2565_s29 + $0x8] sm:$0xff]  ;;  %v1755_v10 = vld [vmem:[%s2565_s29] sm:$0xff]  ;;  %s2567_s0 = sld [smem:[#allocation8_spill]]  ;;  %s1941_s23 = smov 120  }
  0x13   :  { %v132_v9 = vsel %vm124_vm0, %v1756_v8, 0  ;;  %v129_v11 = vsel %vm124_vm0, %v1755_v10, 0  ;;  %s1942_s1 = smov 64   ;;  %s1943_s5 = smov 96   ;;  %vm201_vm1 = vcmask 1043456   ;;  %vm166_vm2 = vcmask 64512  }
  0x14   :  { %s2556_s24 = smov 88   ;;  %s1945_s6 = smov 56   ;;  %vm401_vm3 = vcmask 130048   ;;  %vm403_vm4 = vcmask 195584  }
  0x15   :  { %s1946_s25 = smov 80   ;;  %s2554_s26 = smov 72  }
  0x16   :  { %s1948_s2 = smov 112   ;;  %s1949_s27 = smov 104  }
  0x17   :  { %v2100_v12 = vld [vmem:[%s2566_s3] sm:$0xff]  ;;  %v2105_v13 = vld [vmem:[%s2566_s3 + $0x8] sm:$0xff]  ;;  %s1950_s3 = smov 48   ;;  %s1951_s28 = smov 40  }
  0x18   :  { %149 = vmatpush.bf16.xpose.msra.mxu0 %v141_v3  ;;  %v77_v14 = vpack.c.bf16 %v2105_v13, %v2100_v12  ;;  %v1824_v15 = vld [vmem:[%s2567_s0] ss:$0 sm:$0xff]  ;;  %s2551_s30 = smov 16   ;;  %s2552_s4 = smov 8  }
  0x19   :  { %s2550_s29 = smov 24  }
  0x20   :  { %150 = vmatpush.bf16.xpose.msra.mxu0 %v138_v5 }
  0x28   :  { %151 = vmatpush.bf16.xpose.msra.mxu0 %v135_v7 }
  0x30   :  { %152 = vmatpush.bf16.xpose.msra.mxu0 %v132_v9 }
  0x38   :  { %153 = vmatpush.bf16.xpose.msra.mxu0 %v129_v11 }
  0x3f   :  { %1652 = vmatmul.msk.bf16.vlgmr.msra.gmra.mxu0 %vm124_vm0, %v77_v14 }
  0xbc   :  { %v155_v16 = vpop.f32.mrf.mxu0 }
  0xbd   :  { %v156_v17 = vadd.f32 %v1824_v15, %v155_v16 }
  0xbf   :  { %v160_v18 = vpack.c.bf16 %v156_v17, %v156_v17 }
  0xc1   :  { %v162_v19 = vunpack.c.l.b16 %v160_v18 }
  0xc3   :  { %v2113_v20 = vpack.c.b16 %v162_v19, %v162_v19 }
  0xc4   :  { %v157_v21 = vpop.f32.mrf.mxu0 }
  0xc5   :  { %220 = vrot.lane.b32.xlu2 %v2113_v20, %s1941_s23  ;;  %196 = vrot.lane.b32.xlu1 %v2113_v20, %s1942_s1  ;;  %v158_v22 = vadd.f32 %v1824_v15, %v157_v21 }
  0xc6   :  { %164 = vrot.lane.b32.xlu0 %v2113_v20, %s1943_s5 }
  0xc7   :  { %v2133_v23 = vpack.c.bf16 %v158_v22, %v158_v22 }
  0xc9   :  { %v407_v24 = vunpack.c.l.b16 %v2133_v23 }
  0xcb   :  { %v2138_v25 = vpack.c.b16 %v407_v24, %v407_v24 }
  0xcd   :  { %222 = vrot.lane.b32.xlu1 %v2113_v20, %s2556_s24 }
  0xd5   :  { %253 = vrot.lane.b32.xlu1 %v2113_v20, %s1945_s6 }
  0xdd   :  { %278 = vrot.lane.b32.xlu1 %v2113_v20, %s1946_s25 }
  0xe5   :  { %334 = vrot.lane.b32.xlu1 %v2113_v20, %s2554_s26 }
  0xed   :  { %276 = vrot.lane.b32.xlu1 %v2113_v20, %s1948_s2 }
  0xf5   :  { %332 = vrot.lane.b32.xlu1 %v2113_v20, %s1949_s27 }
  0xfd   :  { %309 = vrot.lane.b32.xlu1 %v2113_v20, %s1950_s3 }
 0x105   :  { %465 = vrot.lane.b32.xlu1 %v2138_v25, %s2556_s24  ;;  %s2571_s24 = sld [smem:[#allocation11_spill]] }
 0x10d   :  { %463 = vrot.lane.b32.xlu1 %v2138_v25, %s1941_s23 }
 0x115   :  { %577 = vrot.lane.b32.xlu1 %v2138_v25, %s2554_s26 }
 0x11f   :  { %v221_v53 = vpop.permute.xlu2 %220 }
 0x137   :  { %v197_v26 = vpop.permute.xlu1 %196 }
 0x138   :  { %v165_v27 = vpop.permute.xlu0 %164  ;;  %v203_v28 = vsel %vm201_vm1, %v197_v26, 0 }
 0x139   :  { %v171_v29 = vsel %vm166_vm2, %v165_v27, 0  ;;  %212 = vmatpush.bf16.msra.mxu3 %v203_v28 }
 0x13a   :  { %180 = vmatpush.bf16.xpose.msra.mxu1 %v171_v29 }
 0x13f   :  { %v223_v30 = vpop.permute.xlu1 %222 }
 0x140   :  { %v228_v31 = vsel %vm166_vm2, %v223_v30, 0 }
 0x141   :  { %1653 = vmatmul.msk.bf16.vlgmr.msra.gmra.mxu1 %vm166_vm2, %v160_v18  ;;  %237 = vmatpush.bf16.xpose.msrb.mxu3 %v228_v31 }
 0x147   :  { %v254_v32 = vpop.permute.xlu1 %253 }
 0x148   :  { %v259_v33 = vsel %vm201_vm1, %v254_v32, 0 }
 0x149   :  { %268 = vmatpush.bf16.msra.mxu2 %v259_v33 }
 0x14f   :  { %v279_v34 = vpop.permute.xlu1 %278 }
 0x150   :  { %v284_v35 = vsel %vm166_vm2, %v279_v34, 0 }
 0x151   :  { %293 = vmatpush.bf16.xpose.msrb.mxu1 %v284_v35 }
 0x157   :  { %v335_v36 = vpop.permute.xlu1 %334 }
 0x158   :  { %v340_v37 = vsel %vm166_vm2, %v335_v36, 0 }
 0x159   :  { %349 = vmatpush.bf16.xpose.msrb.mxu2 %v340_v37 }
 0x15f   :  { %v277_v38 = vpop.permute.xlu1 %276 }
 0x160   :  { %1657 = vmatmul.msk.bf16.vlgmr.msrb.gmra.mxu1 %vm166_vm2, %v277_v38 }
 0x167   :  { %v333_v45 = vpop.permute.xlu1 %332 }
 0x16f   :  { %v310_v49 = vpop.permute.xlu1 %309 }
 0x170   :  { %v315_v51 = vsel %vm201_vm1, %v310_v49, 0 }
 0x177   :  { %v466_v5 = vpop.permute.xlu1 %465 }
 0x178   :  { %v471_v8 = vsel %vm166_vm2, %v466_v5, 0 }
 0x1be   :  { %v182_v39 = vpop.f32.mrf.mxu1 }
 0x1bf   :  { %v186_v40 = vsel %vm166_vm2, %v182_v39, -inf }
 0x1c0   :  { %187 = vmax.xlane.f32.xlu0 %v186_v40 }
 0x1c6   :  { %v184_v41 = vpop.f32.mrf.mxu1 }
 0x1d4   :  { %409 = vrot.lane.b32.xlu0 %v2138_v25, %s1943_s5 }
 0x1dd   :  { %v295_v42 = vpop.f32.mrf.mxu1 }
 0x1de   :  { %v299_v60 = vsel %vm166_vm2, %v295_v42, -inf }
 0x1e5   :  { %v297_v43 = vpop.f32.mrf.mxu1 }
 0x233   :  { %v188_v44 = vpop.xlane.xlu0 %187 }
 0x234   :  { %v189_v46 = vsub.f32 %v182_v39, %v188_v44 }
 0x236   :  { %v190_v47 = vmul.f32 1.442695, %v189_v46 }
 0x238   :  { %1837 = vpow2.f32 %v190_v47 }
 0x23e   :  { %v2157_v48 = vpop.eup %1837 }
 0x23f   :  { %v195_v50 = vpack.c.bf16 %v2157_v48, %v2157_v48 }
 0x241   :  { %1654 = vmatmul.msk.bf16.vlgmr.msra.gmra.mxu3 %vm166_vm2, %v195_v50 }
 0x242   :  { %324 = vmatpush.bf16.msra.mxu3 %v315_v51 }
 0x246   :  { %v410_v52 = vpop.permute.xlu0 %409 }
 0x247   :  { %v415_v54 = vsel %vm166_vm2, %v410_v52, 0 }
 0x251   :  { %1655 = vmatmul.msk.bf16.vlgmr.msrb.gmra.mxu3 %vm166_vm2, %v221_v53 }
 0x252   :  { %424 = vmatpush.bf16.xpose.msrb.mxu3 %v415_v54 }
 0x2c4   :  { %v2165_v55 = vpop.f32.mrf.mxu3 }
 0x2cc   :  { %v216_v56 = vpop.f32.mrf.mxu3 }
 0x2d4   :  { %v239_v57 = vpop.f32.mrf.mxu3 }
 0x2d5   :  { %v243_v58 = vsel %vm166_vm2, %v239_v57, -inf }
 0x2d6   :  { %244 = vmax.xlane.f32.xlu2 %v243_v58 }
 0x2dc   :  { %v241_v59 = vpop.f32.mrf.mxu3 }
 0x2de   :  { %300 = vmax.xlane.f32.xlu2 %v299_v60 }
 0x2f6   :  { %365 = vrot.lane.b32.xlu2 %v2113_v20, %s1951_s28 }
 0x2fe   :  { %519 = vrot.lane.b32.xlu2 %v2138_v25, %s1948_s2 }
 0x349   :  { %v245_v61 = vpop.xlane.xlu2 %244 }
 0x34a   :  { %v246_v62 = vsub.f32 %v239_v57, %v245_v61 }
 0x34c   :  { %v247_v63 = vmul.f32 1.442695, %v246_v62 }
 0x34e   :  { %1839 = vpow2.f32 %v247_v63  ;;  %v192_v63 = vsel %vm166_vm2, %v2157_v48, 0.0 }
 0x351   :  { %v301_v0 = vpop.xlane.xlu2 %300 }
 0x352   :  { %v302_v1 = vsub.f32 %v295_v42, %v301_v0 }
 0x354   :  { %v2173_v2 = vpop.eup %1839  ;;  %v303_v3 = vmul.f32 1.442695, %v302_v1 }
 0x355   :  { %v252_v4 = vpack.c.bf16 %v2173_v2, %v2173_v2  ;;  %v249_v53 = vsel %vm166_vm2, %v2173_v2, 0.0 }
 0x356   :  { %1841 = vpow2.f32 %v303_v3 }
 0x357   :  { %1656 = vmatmul.msk.bf16.vlgmr.msra.gmra.mxu2 %vm166_vm2, %v252_v4 }
 0x359   :  { %v366_v6 = vpop.permute.xlu2 %365 }
 0x35a   :  { %v371_v7 = vsel %vm201_vm1, %v366_v6, 0 }
 0x35b   :  { %380 = vmatpush.bf16.msra.mxu1 %v371_v7 }
 0x35c   :  { %v2180_v9 = vpop.eup %1841 }
 0x35d   :  { %v308_v10 = vpack.c.bf16 %v2180_v9, %v2180_v9  ;;  %v305_v56 = vsel %vm166_vm2, %v2180_v9, 0.0 }
 0x35f   :  { %480 = vmatpush.bf16.xpose.msrb.mxu1 %v471_v8  ;;  %1658 = vmatmul.msk.bf16.vlgmr.msra.gmra.mxu3 %vm166_vm2, %v308_v10 }
 0x361   :  { %v520_v37 = vpop.permute.xlu2 %519 }
 0x367   :  { %1659 = vmatmul.msk.bf16.vlgmr.msrb.gmra.mxu2 %vm166_vm2, %v333_v45 }
 0x36f   :  { %1661 = vmatmul.msk.bf16.vlgmr.msrb.gmra.mxu3 %vm166_vm2, %v2133_v23  ;;  %v464_v23 = vpop.permute.xlu1 %463 }
 0x377   :  { %v578_v28 = vpop.permute.xlu1 %577 }
 0x378   :  { %v583_v31 = vsel %vm166_vm2, %v578_v28, 0 }
 0x3da   :  { %v2188_v11 = vpop.f32.mrf.mxu2 }
 0x3e2   :  { %v272_v14 = vpop.f32.mrf.mxu2  ;;  %v2190_v15 = vpop.f32.mrf.mxu3 }
 0x3ea   :  { %v328_v16 = vpop.f32.mrf.mxu3  ;;  %v351_v17 = vpop.f32.mrf.mxu2 }
 0x3eb   :  { %v355_v18 = vsel %vm166_vm2, %v351_v17, -inf }
 0x3ec   :  { %356 = vmax.xlane.f32.xlu0 %v355_v18 }
 0x3f2   :  { %v353_v19 = vpop.f32.mrf.mxu2  ;;  %v426_v20 = vpop.f32.mrf.mxu3 }
 0x3f3   :  { %v430_v21 = vsel %vm166_vm2, %v426_v20, -inf }
 0x3f4   :  { %431 = vmax.xlane.f32.xlu1 %v430_v21 }
 0x3fa   :  { %v428_v22 = vpop.f32.mrf.mxu3 }
 0x400   :  { %521 = vrot.lane.b32.xlu0 %v2138_v25, %s1946_s25 }
 0x408   :  { %575 = vrot.lane.b32.xlu0 %v2138_v25, %s1949_s27 }
 0x410   :  { %440 = vrot.lane.b32.xlu0 %v2138_v25, %s1942_s1  ;;  %s2570_s1 = sld [smem:[#allocation6_spill]] }
 0x418   :  { %496 = vrot.lane.b32.xlu0 %v2138_v25, %s1945_s6  ;;  %s2568_s6 = sld [smem:[#allocation9_spill]] }
 0x45f   :  { %v357_v24 = vpop.xlane.xlu0 %356 }
 0x460   :  { %v358_v26 = vsub.f32 %v351_v17, %v357_v24 }
 0x462   :  { %v359_v27 = vmul.f32 1.442695, %v358_v26 }
 0x464   :  { %1843 = vpow2.f32 %v359_v27 }
 0x467   :  { %v432_v32 = vpop.xlane.xlu1 %431 }
 0x468   :  { %v433_v35 = vsub.f32 %v426_v20, %v432_v32 }
 0x46a   :  { %v1844_v29 = vpop.eup %1843  ;;  %v434_v36 = vmul.f32 1.442695, %v433_v35 }
 0x46b   :  { %v364_v30 = vpack.c.bf16 %v1844_v29, %v1844_v29  ;;  %v361_v60 = vsel %vm166_vm2, %v1844_v29, 0.0 }
 0x46c   :  { %1845 = vpow2.f32 %v434_v36 }
 0x46d   :  { %1660 = vmatmul.msk.bf16.vlgmr.msra.gmra.mxu1 %vm166_vm2, %v364_v30 }
 0x46e   :  { %592 = vmatpush.bf16.xpose.msra.mxu1 %v583_v31 }
 0x472   :  { %v522_v33 = vpop.permute.xlu0 %521  ;;  %v2207_v39 = vpop.eup %1845 }
 0x473   :  { %v527_v34 = vsel %vm166_vm2, %v522_v33, 0  ;;  %v439_v42 = vpack.c.bf16 %v2207_v39, %v2207_v39  ;;  %v436_v21 = vsel %vm166_vm2, %v2207_v39, 0.0 }
 0x474   :  { %536 = vmatpush.bf16.xpose.msrb.mxu0 %v527_v34 }
 0x47a   :  { %v576_v38 = vpop.permute.xlu0 %575 }
 0x47b   :  { %1665 = vmatmul.msk.bf16.vlgmr.msrb.gmra.mxu0 %vm166_vm2, %v520_v37 }
 0x47d   :  { %1663 = vmatmul.msk.bf16.vlgmr.msrb.gmra.mxu1 %vm166_vm2, %v464_v23 }
 0x482   :  { %v441_v40 = vpop.permute.xlu0 %440 }
 0x483   :  { %v446_v41 = vsel %vm201_vm1, %v441_v40, 0 }
 0x484   :  { %455 = vmatpush.bf16.msra.mxu2 %v446_v41 }
 0x487   :  { %1662 = vmatmul.msk.bf16.vlgmr.msra.gmra.mxu2 %vm166_vm2, %v439_v42 }
 0x48a   :  { %v497_v43 = vpop.permute.xlu0 %496 }
 0x48b   :  { %v502_v44 = vsel %vm201_vm1, %v497_v43, 0 }
 0x48c   :  { %511 = vmatpush.bf16.msra.mxu3 %v502_v44 }
 0x48d   :  { %1667 = vmatmul.msk.bf16.vlgmr.msra.gmra.mxu1 %vm166_vm2, %v576_v38 }
 0x4ea   :  { %v2215_v45 = vpop.f32.mrf.mxu1 }
 0x4f2   :  { %v384_v46 = vpop.f32.mrf.mxu1 }
 0x4f8   :  { %v538_v47 = vpop.f32.mrf.mxu0 }
 0x4f9   :  { %v542_v49 = vsel %vm166_vm2, %v538_v47, -inf }
 0x4fa   :  { %543 = vmax.xlane.f32.xlu0 %v542_v49  ;;  %v482_v50 = vpop.f32.mrf.mxu1 }
 0x4fb   :  { %v486_v51 = vsel %vm166_vm2, %v482_v50, -inf }
 0x4fc   :  { %487 = vmax.xlane.f32.xlu2 %v486_v51 }
 0x500   :  { %v540_v52 = vpop.f32.mrf.mxu0 }
 0x502   :  { %250 = vadd.xlane.f32.xlu0 %v249_v53  ;;  %v484_v54 = vpop.f32.mrf.mxu1 }
 0x503   :  { %v1762_v54 = vld [vmem:[%s2568_s6 + $0x8] sm:$0xff] }
 0x50a   :  { %v2223_v57 = vpop.f32.mrf.mxu2  ;;  %306 = vadd.xlane.f32.xlu0 %v305_v56  ;;  %v594_v58 = vpop.f32.mrf.mxu1  ;;  %v672_v56 = vsel %vm124_vm0, %v1762_v54, 0  ;;  %v1763_v54 = vld [vmem:[%s2571_s24] sm:$0xff] }
 0x50b   :  { %v598_v59 = vsel %vm166_vm2, %v594_v58, -inf  ;;  %680 = vmatpush.bf16.xpose.msra.mxu0 %v672_v56 }
 0x50c   :  { %599 = vmax.xlane.f32.xlu1 %v598_v59 }
 0x512   :  { %v459_v61 = vpop.f32.mrf.mxu2  ;;  %362 = vadd.xlane.f32.xlu0 %v361_v60  ;;  %v596_v62 = vpop.f32.mrf.mxu1 }
 0x514   :  { %552 = vrot.lane.b32.xlu2 %v2138_v25, %s1950_s3 }
 0x51a   :  { %193 = vadd.xlane.f32.xlu0 %v192_v63 }
 0x525   :  { %608 = vrot.lane.b32.xlu1 %v2138_v25, %s1951_s28 }
 0x56d   :  { %v544_v0 = vpop.xlane.xlu0 %543 }
 0x56e   :  { %v545_v1 = vsub.f32 %v538_v47, %v544_v0 }
 0x56f   :  { %v488_v2 = vpop.xlane.xlu2 %487 }
 0x570   :  { %v546_v3 = vmul.f32 1.442695, %v545_v1  ;;  %v489_v4 = vsub.f32 %v482_v50, %v488_v2 }
 0x572   :  { %1847 = vpow2.f32 %v546_v3  ;;  %v490_v5 = vmul.f32 1.442695, %v489_v4 }
 0x574   :  { %1849 = vpow2.f32 %v490_v5 }
 0x575   :  { %v251_v26 = vpop.xlane.xlu0 %250 }
 0x577   :  { %v553_v6 = vpop.permute.xlu2 %552 }
 0x578   :  { %v1848_v7 = vpop.eup %1847  ;;  %v558_v8 = vsel %vm201_vm1, %v553_v6, 0 }
 0x579   :  { %v551_v9 = vpack.c.bf16 %v1848_v7, %v1848_v7  ;;  %567 = vmatpush.bf16.msrb.mxu2 %v558_v8  ;;  %v548_v48 = vsel %vm166_vm2, %v1848_v7, 0.0 }
 0x57a   :  { %v1850_v10 = vpop.eup %1849  ;;  %549 = vadd.xlane.f32.xlu1 %v548_v48 }
 0x57b   :  { %v495_v14 = vpack.c.bf16 %v1850_v10, %v1850_v10  ;;  %v492_v25 = vsel %vm166_vm2, %v1850_v10, 0.0 }
 0x57c   :  { %493 = vadd.xlane.f32.xlu2 %v492_v25  ;;  %1666 = vmatmul.msk.bf16.vlgmr.msrb.gmra.mxu2 %vm166_vm2, %v551_v9 }
 0x57d   :  { %1664 = vmatmul.msk.bf16.vlgmr.msra.gmra.mxu3 %vm166_vm2, %v495_v14  ;;  %v307_v27 = vpop.xlane.xlu0 %306 }
 0x57f   :  { %v600_v16 = vpop.xlane.xlu1 %599 }
 0x580   :  { %v601_v17 = vsub.f32 %v594_v58, %v600_v16  ;;  %v1761_v58 = vld [vmem:[%s2568_s6] sm:$0xff]  ;;  %s2569_s6 = sld [smem:[#allocation10_spill]] }
 0x581   :  { %v669_v59 = vsel %vm124_vm0, %v1761_v58, 0  ;;  %v776_v58 = vsel %vm124_vm0, %v1763_v54, 0 }
 0x582   :  { %v602_v18 = vmul.f32 1.442695, %v601_v17  ;;  %681 = vmatpush.bf16.xpose.msra.mxu0 %v669_v59 }
 0x584   :  { %1851 = vpow2.f32 %v602_v18 }
 0x585   :  { %1853 = vrcp.f32 %v307_v27  ;;  %v363_v42 = vpop.xlane.xlu0 %362 }
 0x586   :  { %1855 = vrcp.f32 %v251_v26  ;;  %v1955_v26 = vmov 32.0  }
 0x58a   :  { %v1852_v19 = vpop.eup %1851 }
 0x58b   :  { %v604_v20 = vsel %vm166_vm2, %v1852_v19, 0.0  ;;  %v607_v24 = vpack.c.bf16 %v1852_v19, %v1852_v19  ;;  %v1854_v30 = vpop.eup %1853 }
 0x58c   :  { %605 = vadd.xlane.f32.xlu0 %v604_v20  ;;  %v1856_v31 = vpop.eup %1855  ;;  %v331_v35 = vmul.f32 %v1854_v30, %v2190_v15 }
 0x58d   :  { %v275_v38 = vmul.f32 %v1856_v31, %v2188_v11  ;;  %v194_v46 = vpop.xlane.xlu0 %193  ;;  %v1767_v31 = vld [vmem:[%s2530_s8 + $0x10] sm:$0xff] }
 0x594   :  { %437 = vadd.xlane.f32.xlu0 %v436_v21 }
 0x597   :  { %v609_v22 = vpop.permute.xlu1 %608 }
 0x598   :  { %v614_v23 = vsel %vm201_vm1, %v609_v22, 0 }
 0x599   :  { %623 = vmatpush.bf16.msrb.mxu3 %v614_v23 }
 0x59c   :  { %1668 = vmatmul.msk.bf16.vlgmr.msrb.gmra.mxu3 %vm166_vm2, %v607_v24 }
 0x5ed   :  { %v550_v28 = vpop.xlane.xlu1 %549 }
 0x5ee   :  { %1857 = vrcp.f32 %v550_v28 }
 0x5ef   :  { %v494_v29 = vpop.xlane.xlu2 %493 }
 0x5f0   :  { %1859 = vrcp.f32 %v494_v29  ;;  %v1768_v29 = vld [vmem:[%s2530_s8 + $0x18] sm:$0xff] }
 0x5f1   :  { %1861 = vrcp.f32 %v363_v42 }
 0x5f4   :  { %v1858_v32 = vpop.eup %1857 }
 0x5f6   :  { %v1860_v34 = vpop.eup %1859 }
 0x5f7   :  { %v1862_v15 = vpop.eup %1861 }
 0x5f8   :  { %v387_v11 = vmul.f32 %v1862_v15, %v2215_v45  ;;  %v1765_v15 = vld [vmem:[%s2530_s8] sm:$0xff] }
 0x5ff   :  { %v569_v33 = vpop.f32.mrf.mxu2  ;;  %v606_v47 = vpop.xlane.xlu0 %605 }
 0x600   :  { %v574_v36 = vmul.f32 %v1858_v32, %v569_v33  ;;  %v513_v37 = vpop.f32.mrf.mxu3  ;;  %1863 = vrcp.f32 %v606_v47  ;;  %v838_v32 = vsel %vm124_vm0, %v1767_v31, 0 }
 0x601   :  { %v518_v39 = vmul.f32 %v1860_v34, %v513_v37  ;;  %1865 = vrcp.f32 %v194_v46  ;;  %v1766_v34 = vld [vmem:[%s2530_s8 + $0x8] sm:$0xff] }
 0x602   :  { %v1799_v40 = vpack.i.bf16 %v574_v36, %v331_v35  ;;  %v835_v37 = vsel %vm124_vm0, %v1766_v34, 0 }
 0x603   :  { %v1794_v41 = vpack.i.bf16 %v518_v39, %v275_v38 }
 0x604   :  { %1800 = vrot.lane.b32.xlu0 %v1799_v40, %s2551_s30 }
 0x605   :  { %1795 = vrot.lane.b32.xlu2 %v1794_v41, %s2552_s4 }
 0x606   :  { %v1864_v49 = vpop.eup %1863 }
 0x607   :  { %v571_v43 = vpop.f32.mrf.mxu2  ;;  %v438_v45 = vpop.xlane.xlu0 %437 }
 0x608   :  { %v515_v44 = vpop.f32.mrf.mxu3  ;;  %1867 = vrcp.f32 %v438_v45  ;;  %v1866_v61 = vpop.eup %1865 }
 0x609   :  { %v219_v4 = vmul.f32 %v1866_v61, %v2165_v55  ;;  %1869 = vrcp.f32 %v1955_v26 }
 0x60e   :  { %v1868_v63 = vpop.eup %1867 }
 0x60f   :  { %v462_v5 = vmul.f32 %v1868_v63, %v2223_v57  ;;  %v1825_v57 = vld [vmem:[%s2569_s6] ss:$0 sm:$0xff]  ;;  %v1870_v27 = vpop.eup %1869 }
 0x610   :  { %v697_v28 = vmul.f32 32.0, %v1870_v27  ;;  %vm701_vm5 = vweird.f32 %v1870_v27 }
 0x612   :  { %v698_v30 = vsub.f32 1.0, %v697_v28 }
 0x61f   :  { %v625_v50 = vpop.f32.mrf.mxu3 }
 0x620   :  { %v630_v51 = vmul.f32 %v1864_v49, %v625_v50  ;;  %v832_v49 = vsel %vm124_vm0, %v1765_v15, 0  ;;  %v75_v50 = vld [vmem:[%s2570_s1] sm:$0xff] }
 0x622   :  { %v1804_v52 = vpack.i.bf16 %v630_v51, %v387_v11  ;;  %v76_v11 = vld [vmem:[%s2570_s1 + $0x8] sm:$0xff] }
 0x623   :  { %v795_v51 = vpack.c.bf16 %v76_v11, %v75_v50 }
 0x624   :  { %1805 = vrot.lane.b32.xlu1 %v1804_v52, %s2550_s29  ;;  %v1764_v52 = vld [vmem:[%s2571_s24 + $0x8] sm:$0xff] }
 0x627   :  { %v627_v53 = vpop.f32.mrf.mxu3 }
 0x628   :  { %v779_v53 = vsel %vm124_vm0, %v1764_v52, 0 }
 0x629   :  { %787 = vmatpush.bf16.xpose.msra.mxu2 %v779_v53 }
 0x631   :  { %788 = vmatpush.bf16.xpose.msra.mxu2 %v776_v58 }
 0x65f   :  { %v1796_v60 = vpop.permute.xlu2 %1795 }
 0x660   :  { %v1798_v0 = vunpack.i.h.bf16 %v1796_v60  ;;  %v1797_v1 = vunpack.i.l.bf16 %v1796_v60 }
 0x662   :  { %v400_v7 = vsel %vm166_vm2, %v219_v4, %v1797_v1  ;;  %v643_v8 = vsel %vm166_vm2, %v462_v5, %v1798_v0 }
 0x676   :  { %v1801_v62 = vpop.permute.xlu0 %1800 }
 0x677   :  { %v1803_v2 = vunpack.i.h.bf16 %v1801_v62  ;;  %v1802_v3 = vunpack.i.l.bf16 %v1801_v62 }
 0x679   :  { %v644_v10 = vsel %vm401_vm3, %v643_v8, %v1803_v2  ;;  %v402_v14 = vsel %vm401_vm3, %v400_v7, %v1802_v3 }
 0x696   :  { %v1806_v6 = vpop.permute.xlu1 %1805 }
 0x697   :  { %v1808_v9 = vunpack.i.h.bf16 %v1806_v6  ;;  %v1807_v48 = vunpack.i.l.bf16 %v1806_v6 }
 0x699   :  { %v645_v25 = vsel %vm403_vm4, %v644_v10, %v1808_v9  ;;  %v404_v16 = vsel %vm403_vm4, %v402_v14, %v1807_v48  ;;  %v1826_v10 = vld [vmem:[%s2538_s16] ss:$0 sm:$0xff] }
 0x69a   :  { %v646_v55 = vpack.c.bf16 %v645_v25, %v404_v16 }
 0x69c   :  { %1677 = vmatmul.msk.bf16.vlgmr.msra.gmra.mxu0 %vm124_vm0, %v646_v55  ;;  %v1827_v55 = vld [vmem:[%s2539_s17] ss:$0 sm:$0xff] }
 0x719   :  { %v683_v17 = vpop.f32.mrf.mxu0 }
 0x71a   :  { %v684_v18 = vadd.f32 %v1825_v57, %v683_v17 }
 0x71c   :  { %v688_v19 = vadd.f32 %v684_v18, %v2100_v12  ;;  %v841_v12 = vsel %vm124_vm0, %v1768_v29, 0 }
 0x71d   :  { %847 = vmatpush.bf16.xpose.msrb.mxu1 %v841_v12 }
 0x71e   :  { %v690_v20 = vsel %vm124_vm0, %v688_v19, 0.0 }
 0x71f   :  { %691 = vadd.xlane.f32.xlu2 %v690_v20 }
 0x721   :  { %v685_v21 = vpop.f32.mrf.mxu0 }
 0x722   :  { %v686_v22 = vadd.f32 %v1825_v57, %v685_v21 }
 0x724   :  { %v689_v23 = vadd.f32 %v686_v22, %v2105_v13  ;;  %v699_v13 = vmul.f32 %v1870_v27, %v698_v30  ;;  %v1828_v22 = vld [vmem:[%s2531_s9] ss:$0 sm:$0xff] }
 0x725   :  { %848 = vmatpush.bf16.xpose.msrb.mxu1 %v838_v32 }
 0x726   :  { %v693_v24 = vsel %vm124_vm0, %v689_v23, 0.0  ;;  %v700_v33 = vadd.f32 %v1870_v27, %v699_v13 }
 0x727   :  { %694 = vadd.xlane.f32.xlu0 %v693_v24 }
 0x728   :  { %v2284_v35 = vsel %vm701_vm5, %v1870_v27, %v700_v33  ;;  %v1829_v33 = vld [vmem:[%s2529_s7] ss:$0 sm:$0xff]  ;;  %s2572_s7 = smov 88  }
 0x72d   :  { %849 = vmatpush.bf16.xpose.msrb.mxu1 %v835_v37 }
 0x735   :  { %850 = vmatpush.bf16.xpose.msrb.mxu1 %v832_v49 }
 0x73c   :  { %1703 = vmatmul.msk.bf16.vlgmr.msrb.gmra.mxu1 %vm124_vm0, %v795_v51 }
 0x792   :  { %v692_v36 = vpop.xlane.xlu2 %691 }
 0x793   :  { %v703_v38 = vmul.f32 %v2284_v35, %v692_v36 }
 0x795   :  { %v705_v39 = vsub.f32 %v688_v19, %v703_v38 }
 0x797   :  { %v707_v40 = vmul.f32 %v705_v39, %v705_v39 }
 0x799   :  { %v709_v41 = vsel %vm124_vm0, %v707_v40, 0.0 }
 0x79a   :  { %v695_v42 = vpop.xlane.xlu0 %694  ;;  %710 = vadd.xlane.f32.xlu1 %v709_v41 }
 0x79b   :  { %v704_v43 = vmul.f32 %v2284_v35, %v695_v42 }
 0x79d   :  { %v706_v44 = vsub.f32 %v689_v23, %v704_v43 }
 0x79f   :  { %v708_v46 = vmul.f32 %v706_v44, %v706_v44 }
 0x7a1   :  { %v712_v47 = vsel %vm124_vm0, %v708_v46, 0.0 }
 0x7a2   :  { %713 = vadd.xlane.f32.xlu2 %v712_v47 }
 0x7b9   :  { %v852_v23 = vpop.f32.mrf.mxu1 }
 0x7ba   :  { %v853_v24 = vadd.f32 %v1828_v22, %v852_v23 }
 0x7bc   :  { %v858_v26 = vpack.c.bf16 %v853_v24, %v853_v24 }
 0x7be   :  { %v863_v27 = vsel %vm166_vm2, %v858_v26, 0  ;;  %v889_v28 = vunpack.c.l.b16 %v858_v26 }
 0x7bf   :  { %872 = vmatpush.bf16.xpose.msra.mxu3 %v863_v27 }
 0x7c0   :  { %v2329_v29 = vpack.c.b16 %v889_v28, %v889_v28 }
 0x7c1   :  { %v854_v30 = vpop.f32.mrf.mxu1 }
 0x7c2   :  { %919 = vrot.lane.b32.xlu2 %v2329_v29, %s1941_s23  ;;  %v855_v12 = vadd.f32 %v1828_v22, %v854_v30  ;;  %975 = vrot.lane.b32.xlu0 %v2329_v29, %s1948_s2 }
 0x7c3   :  { %891 = vrot.lane.b32.xlu1 %v2329_v29, %s1943_s5 }
 0x7c4   :  { %v2337_v31 = vpack.c.bf16 %v855_v12, %v855_v12 }
 0x7c6   :  { %v1132_v13 = vunpack.c.l.b16 %v2337_v31 }
 0x7c8   :  { %v2342_v32 = vpack.c.b16 %v1132_v13, %v1132_v13 }
 0x7ca   :  { %1031 = vrot.lane.b32.xlu2 %v2329_v29, %s1949_s27 }
 0x7d2   :  { %1162 = vrot.lane.b32.xlu2 %v2342_v32, %s1941_s23 }
 0x7da   :  { %1274 = vrot.lane.b32.xlu2 %v2342_v32, %s1949_s27 }
 0x7e2   :  { %1006 = vrot.lane.b32.xlu2 %v2329_v29, %s1946_s25 }
 0x80d   :  { %v711_v56 = vpop.xlane.xlu1 %710 }
 0x80e   :  { %v715_v59 = vmul.f32 %v711_v56, %v2284_v35 }
 0x810   :  { %v717_v45 = vadd.f32 1e-05, %v715_v59 }
 0x812   :  { %1871 = vrsqrt.f32 %v717_v45  ;;  %vm725_vm7 = vweird.f32 %v717_v45 }
 0x815   :  { %v714_v60 = vpop.xlane.xlu2 %713 }
 0x816   :  { %v716_v61 = vmul.f32 %v714_v60, %v2284_v35 }
 0x818   :  { %v1872_v62 = vpop.eup %1871  ;;  %v718_v63 = vadd.f32 1e-05, %v716_v61 }
 0x819   :  { %v720_v0 = vmul.f32 %v1872_v62, %v717_v45  ;;  %vm726_vm6 = vweird.f32 %v1872_v62 }
 0x81a   :  { %1873 = vrsqrt.f32 %v718_v63  ;;  %vm727_vm8 = vmor %vm725_vm7, %vm726_vm6  ;;  %vm735_vm10 = vweird.f32 %v718_v63 }
 0x81b   :  { %v721_v1 = vmul.f32 %v1872_v62, %v720_v0 }
 0x81d   :  { %v722_v2 = vmul.f32 0.5, %v721_v1  ;;  %v920_v46 = vpop.permute.xlu2 %919 }
 0x81e   :  { %v925_v47 = vsel %vm166_vm2, %v920_v46, 0 }
 0x81f   :  { %v723_v3 = vsub.f32 1.5, %v722_v2  ;;  %934 = vmatpush.bf16.xpose.msrb.mxu2 %v925_v47 }
 0x820   :  { %v1874_v4 = vpop.eup %1873 }
 0x821   :  { %v724_v5 = vmul.f32 %v1872_v62, %v723_v3  ;;  %v730_v6 = vmul.f32 %v1874_v4, %v718_v63  ;;  %vm736_vm9 = vweird.f32 %v1874_v4 }
 0x822   :  { %vm737_vm11 = vmor %vm735_vm10, %vm736_vm9 }
 0x823   :  { %v731_v7 = vmul.f32 %v1874_v4, %v730_v6  ;;  %v728_v8 = vsel %vm727_vm8, %v1872_v62, %v724_v5 }
 0x824   :  { %v739_v14 = vmul.f32 %v728_v8, %v705_v39 }
 0x825   :  { %v732_v9 = vmul.f32 0.5, %v731_v7  ;;  %v1032_v15 = vpop.permute.xlu2 %1031 }
 0x826   :  { %v745_v57 = vmul.f32 %v1826_v10, %v739_v14  ;;  %v1037_v49 = vsel %vm166_vm2, %v1032_v15, 0  ;;  %v1106_v14 = vsel %vm166_vm2, %v2337_v31, 0 }
 0x827   :  { %v733_v48 = vsub.f32 1.5, %v732_v9  ;;  %1046 = vmatpush.bf16.xpose.msra.mxu1 %v1037_v49 }
 0x828   :  { %v2318_v19 = vadd.f32 %v1827_v55, %v745_v57 }
 0x829   :  { %v734_v25 = vmul.f32 %v1874_v4, %v733_v48 }
 0x82b   :  { %v738_v16 = vsel %vm737_vm11, %v1874_v4, %v734_v25 }
 0x82c   :  { %v740_v17 = vmul.f32 %v738_v16, %v706_v44 }
 0x82d   :  { %v1163_v50 = vpop.permute.xlu2 %1162 }
 0x82e   :  { %v746_v18 = vmul.f32 %v1826_v10, %v740_v17  ;;  %v1168_v11 = vsel %vm166_vm2, %v1163_v50, 0 }
 0x82f   :  { %1177 = vmatpush.bf16.xpose.msrb.mxu1 %v1168_v11 }
 0x830   :  { %v2320_v20 = vadd.f32 %v1827_v55, %v746_v18 }
 0x832   :  { %v753_v21 = vpack.c.bf16 %v2320_v20, %v2318_v19 }
 0x834   :  { %1686 = vmatmul.msk.bf16.vlgmr.msra.gmra.mxu2 %vm124_vm0, %v753_v21  ;;  %v976_v52 = vpop.permute.xlu0 %975 }
 0x835   :  { %v1275_v51 = vpop.permute.xlu2 %1274  ;;  %v981_v53 = vsel %vm166_vm2, %v976_v52, 0  ;;  %v892_v54 = vpop.permute.xlu1 %891 }
 0x836   :  { %v897_v56 = vsel %vm201_vm1, %v892_v54, 0  ;;  %v1280_v16 = vsel %vm166_vm2, %v1275_v51, 0 }
 0x837   :  { %906 = vmatpush.bf16.msrb.mxu0 %v897_v56 }
 0x83b   :  { %990 = vmatpush.bf16.xpose.msra.mxu0 %v981_v53 }
 0x83d   :  { %v1007_v58 = vpop.permute.xlu2 %1006 }
 0x83e   :  { %v1012_v59 = vsel %vm201_vm1, %v1007_v58, 0 }
 0x83f   :  { %1021 = vmatpush.bf16.msra.mxu2 %v1012_v59 }
 0x8b7   :  { %v790_v34 = vpop.f32.mrf.mxu2 }
 0x8b8   :  { %v791_v36 = vadd.f32 %v1829_v33, %v790_v34 }
 0x8ba   :  { %v857_v37 = vpack.c.bf16 %v791_v36, %v791_v36 }
 0x8bc   :  { %v915_v38 = vunpack.c.l.b16 %v857_v37  ;;  %1704 = vmatmul.msk.bf16.vlgmr.msra.gmra.mxu3 %vm166_vm2, %v857_v37 }
 0x8be   :  { %v916_v39 = vpack.c.b16 %v915_v38, %v915_v38 }
 0x8bf   :  { %v792_v40 = vpop.f32.mrf.mxu2 }
 0x8c0   :  { %v793_v41 = vadd.f32 %v1829_v33, %v792_v40  ;;  %917 = vrot.lane.b32.xlu0 %v916_v39, %s1941_s23  ;;  %973 = vrot.lane.b32.xlu1 %v916_v39, %s1948_s2 }
 0x8c2   :  { %v2356_v42 = vpack.c.bf16 %v793_v41, %v793_v41 }
 0x8c4   :  { %v1158_v43 = vunpack.c.l.b16 %v2356_v42 }
 0x8c6   :  { %v1159_v44 = vpack.c.b16 %v1158_v43, %v1158_v43 }
 0x8c8   :  { %1160 = vrot.lane.b32.xlu1 %v1159_v44, %s1941_s23  ;;  %s2573_s23 = smov 72  }
 0x8d0   :  { %1216 = vrot.lane.b32.xlu1 %v1159_v44, %s1948_s2 }
 0x8d8   :  { %950 = vrot.lane.b32.xlu1 %v2329_v29, %s2572_s7 }
 0x932   :  { %v918_v45 = vpop.permute.xlu0 %917  ;;  %v974_v60 = vpop.permute.xlu1 %973 }
 0x933   :  { %1706 = vmatmul.msk.bf16.vlgmr.msrb.gmra.mxu2 %vm166_vm2, %v918_v45 }
 0x93a   :  { %v1161_v61 = vpop.permute.xlu1 %1160 }
 0x93f   :  { %v874_v62 = vpop.f32.mrf.mxu3 }
 0x940   :  { %v878_v63 = vsel %vm166_vm2, %v874_v62, -inf }
 0x941   :  { %879 = vmax.xlane.f32.xlu0 %v878_v63 }
 0x942   :  { %v1217_v0 = vpop.permute.xlu1 %1216 }
 0x947   :  { %v876_v1 = vpop.f32.mrf.mxu3 }
 0x94a   :  { %v951_v2 = vpop.permute.xlu1 %950 }
 0x94b   :  { %v956_v3 = vsel %vm201_vm1, %v951_v2, 0 }
 0x94c   :  { %965 = vmatpush.bf16.msrb.mxu3 %v956_v3 }
 0x955   :  { %1029 = vrot.lane.b32.xlu0 %v916_v39, %s1949_s27 }
 0x95d   :  { %1218 = vrot.lane.b32.xlu0 %v2342_v32, %s1948_s2  ;;  %s2576_s2 = smov 24  }
 0x965   :  { %1272 = vrot.lane.b32.xlu0 %v1159_v44, %s1949_s27 }
 0x96d   :  { %1062 = vrot.lane.b32.xlu0 %v2329_v29, %s2573_s23 }
 0x975   :  { %1193 = vrot.lane.b32.xlu0 %v2342_v32, %s2572_s7 }
 0x9b4   :  { %v880_v4 = vpop.xlane.xlu0 %879 }
 0x9b5   :  { %v881_v5 = vsub.f32 %v874_v62, %v880_v4 }
 0x9b6   :  { %v936_v6 = vpop.f32.mrf.mxu2 }
 0x9b7   :  { %v882_v7 = vmul.f32 1.442695, %v881_v5  ;;  %v940_v8 = vsel %vm166_vm2, %v936_v6, -inf }
 0x9b8   :  { %941 = vmax.xlane.f32.xlu2 %v940_v8 }
 0x9b9   :  { %1875 = vpow2.f32 %v882_v7 }
 0x9be   :  { %v938_v9 = vpop.f32.mrf.mxu2 }
 0x9bf   :  { %v2381_v48 = vpop.eup %1875 }
 0x9c0   :  { %v887_v10 = vpack.c.bf16 %v2381_v48, %v2381_v48  ;;  %v884_v3 = vsel %vm166_vm2, %v2381_v48, 0.0 }
 0x9c2   :  { %1705 = vmatmul.msk.bf16.vlgmr.msrb.gmra.mxu0 %vm166_vm2, %v887_v10 }
 0x9c3   :  { %1115 = vmatpush.bf16.xpose.msrb.mxu0 %v1106_v14 }
 0x9c7   :  { %v1030_v25 = vpop.permute.xlu0 %1029 }
 0x9c8   :  { %1710 = vmatmul.msk.bf16.vlgmr.msra.gmra.mxu1 %vm166_vm2, %v1030_v25 }
 0x9c9   :  { %1289 = vmatpush.bf16.xpose.msra.mxu1 %v1280_v16 }
 0x9cf   :  { %v1219_v55 = vpop.permute.xlu0 %1218 }
 0x9d0   :  { %v1224_v57 = vsel %vm166_vm2, %v1219_v55, 0  ;;  %1134 = vrot.lane.b32.xlu2 %v2342_v32, %s1943_s5  ;;  %s2574_s5 = smov 8  }
 0x9d2   :  { %1708 = vmatmul.msk.bf16.vlgmr.msra.gmra.mxu0 %vm166_vm2, %v974_v60 }
 0x9d3   :  { %1233 = vmatpush.bf16.xpose.msra.mxu0 %v1224_v57 }
 0x9d7   :  { %v1273_v17 = vpop.permute.xlu0 %1272 }
 0x9d8   :  { %1714 = vmatmul.msk.bf16.vlgmr.msrb.gmra.mxu1 %vm166_vm2, %v1161_v61 }
 0x9df   :  { %v1063_v18 = vpop.permute.xlu0 %1062 }
 0x9e0   :  { %v1068_v21 = vsel %vm201_vm1, %v1063_v18, 0 }
 0x9e1   :  { %1077 = vmatpush.bf16.msra.mxu3 %v1068_v21 }
 0x9e2   :  { %1712 = vmatmul.msk.bf16.vlgmr.msrb.gmra.mxu0 %vm166_vm2, %v2356_v42 }
 0x9e7   :  { %v1194_v29 = vpop.permute.xlu0 %1193 }
 0x9e8   :  { %1718 = vmatmul.msk.bf16.vlgmr.msra.gmra.mxu1 %vm166_vm2, %v1273_v17  ;;  %v1199_v12 = vsel %vm201_vm1, %v1194_v29, 0 }
 0x9f2   :  { %1716 = vmatmul.msk.bf16.vlgmr.msra.gmra.mxu0 %vm166_vm2, %v1217_v0 }
 0xa2b   :  { %v942_v22 = vpop.xlane.xlu2 %941 }
 0xa2c   :  { %v943_v23 = vsub.f32 %v936_v6, %v942_v22 }
 0xa2e   :  { %v944_v24 = vmul.f32 1.442695, %v943_v23 }
 0xa30   :  { %1877 = vpow2.f32 %v944_v24 }
 0xa33   :  { %v1135_v26 = vpop.permute.xlu2 %1134 }
 0xa34   :  { %v1140_v27 = vsel %vm201_vm1, %v1135_v26, 0 }
 0xa35   :  { %1149 = vmatpush.bf16.msrb.mxu2 %v1140_v27 }
 0xa36   :  { %v1878_v28 = vpop.eup %1877 }
 0xa37   :  { %v949_v30 = vpack.c.bf16 %v1878_v28, %v1878_v28  ;;  %v946_v52 = vsel %vm166_vm2, %v1878_v28, 0.0 }
 0xa39   :  { %1707 = vmatmul.msk.bf16.vlgmr.msrb.gmra.mxu3 %vm166_vm2, %v949_v30 }
 0xa3a   :  { %1208 = vmatpush.bf16.msrb.mxu3 %v1199_v12 }
 0xa3f   :  { %v2403_v31 = vpop.f32.mrf.mxu0 }
 0xa45   :  { %v1048_v13 = vpop.f32.mrf.mxu1 }
 0xa46   :  { %v1052_v33 = vsel %vm166_vm2, %v1048_v13, -inf }
 0xa47   :  { %v910_v34 = vpop.f32.mrf.mxu0  ;;  %1053 = vmax.xlane.f32.xlu1 %v1052_v33 }
 0xa4d   :  { %v1050_v36 = vpop.f32.mrf.mxu1 }
 0xa4f   :  { %v992_v37 = vpop.f32.mrf.mxu0 }
 0xa50   :  { %v996_v38 = vsel %vm166_vm2, %v992_v37, -inf }
 0xa51   :  { %997 = vmax.xlane.f32.xlu0 %v996_v38 }
 0xa55   :  { %v1179_v39 = vpop.f32.mrf.mxu1 }
 0xa56   :  { %v1183_v40 = vsel %vm166_vm2, %v1179_v39, -inf }
 0xa57   :  { %v994_v41 = vpop.f32.mrf.mxu0  ;;  %1184 = vmax.xlane.f32.xlu1 %v1183_v40 }
 0xa5d   :  { %v1181_v42 = vpop.f32.mrf.mxu1 }
 0xa5f   :  { %v1117_v43 = vpop.f32.mrf.mxu0 }
 0xa60   :  { %v1121_v44 = vsel %vm166_vm2, %v1117_v43, -inf }
 0xa61   :  { %1122 = vmax.xlane.f32.xlu1 %v1121_v44 }
 0xa65   :  { %1249 = vrot.lane.b32.xlu0 %v2342_v32, %s1946_s25  ;;  %v1291_v46 = vpop.f32.mrf.mxu1  ;;  %s2575_s25 = smov 16  }
 0xa66   :  { %v1295_v47 = vsel %vm166_vm2, %v1291_v46, -inf }
 0xa67   :  { %v1119_v15 = vpop.f32.mrf.mxu0  ;;  %1296 = vmax.xlane.f32.xlu2 %v1295_v47 }
 0xa6d   :  { %v1293_v49 = vpop.f32.mrf.mxu1 }
 0xa6f   :  { %v1235_v50 = vpop.f32.mrf.mxu0 }
 0xa70   :  { %v1239_v11 = vsel %vm166_vm2, %v1235_v50, -inf }
 0xa71   :  { %1240 = vmax.xlane.f32.xlu1 %v1239_v11 }
 0xa77   :  { %v1237_v51 = vpop.f32.mrf.mxu0 }
 0xa8a   :  { %1305 = vrot.lane.b32.xlu1 %v2342_v32, %s2573_s23 }
 0xa8f   :  { %947 = vadd.xlane.f32.xlu0 %v946_v52 }
 0xaba   :  { %v1054_v53 = vpop.xlane.xlu1 %1053 }
 0xabb   :  { %v1055_v54 = vsub.f32 %v1048_v13, %v1054_v53 }
 0xabc   :  { %v2416_v56 = vpop.f32.mrf.mxu3 }
 0xabd   :  { %v1056_v58 = vmul.f32 1.442695, %v1055_v54 }
 0xabf   :  { %1879 = vpow2.f32 %v1056_v58 }
 0xac4   :  { %v998_v59 = vpop.xlane.xlu0 %997  ;;  %v969_v45 = vpop.f32.mrf.mxu3 }
 0xac5   :  { %v1880_v60 = vpop.eup %1879  ;;  %v999_v61 = vsub.f32 %v992_v37, %v998_v59 }
 0xac6   :  { %v1061_v62 = vpack.c.bf16 %v1880_v60, %v1880_v60  ;;  %v1058_v63 = vsel %vm166_vm2, %v1880_v60, 0.0 }
 0xac7   :  { %v1000_v0 = vmul.f32 1.442695, %v999_v61  ;;  %1059 = vadd.xlane.f32.xlu0 %v1058_v63 }
 0xac8   :  { %1711 = vmatmul.msk.bf16.vlgmr.msra.gmra.mxu3 %vm166_vm2, %v1061_v62 }
 0xac9   :  { %1881 = vpow2.f32 %v1000_v0 }
 0xaca   :  { %v1185_v32 = vpop.xlane.xlu1 %1184 }
 0xacb   :  { %v1186_v1 = vsub.f32 %v1179_v39, %v1185_v32 }
 0xacd   :  { %v1187_v2 = vmul.f32 1.442695, %v1186_v1 }
 0xacf   :  { %v1882_v4 = vpop.eup %1881  ;;  %1883 = vpow2.f32 %v1187_v2  ;;  %885 = vadd.xlane.f32.xlu0 %v884_v3 }
 0xad0   :  { %v1005_v5 = vpack.c.bf16 %v1882_v4, %v1882_v4  ;;  %v1002_v6 = vsel %vm166_vm2, %v1882_v4, 0.0 }
 0xad1   :  { %1003 = vadd.xlane.f32.xlu2 %v1002_v6 }
 0xad2   :  { %1709 = vmatmul.msk.bf16.vlgmr.msra.gmra.mxu2 %vm166_vm2, %v1005_v5  ;;  %v1770_v5 = vld [vmem:[%s2532_s10 + $0x8] sm:$0xff] }
 0xad3   :  { %v1369_v6 = vsel %vm124_vm0, %v1770_v5, 0 }
 0xad4   :  { %v1123_v7 = vpop.xlane.xlu1 %1122  ;;  %1377 = vmatpush.bf16.xpose.msrb.mxu0 %v1369_v6 }
 0xad5   :  { %v1884_v8 = vpop.eup %1883  ;;  %v1124_v9 = vsub.f32 %v1117_v43, %v1123_v7  ;;  %v1769_v7 = vld [vmem:[%s2532_s10] sm:$0xff] }
 0xad6   :  { %v1192_v10 = vpack.c.bf16 %v1884_v8, %v1884_v8  ;;  %v1189_v14 = vsel %vm166_vm2, %v1884_v8, 0.0  ;;  %v1366_v8 = vsel %vm124_vm0, %v1769_v7, 0 }
 0xad7   :  { %v1125_v25 = vmul.f32 1.442695, %v1124_v9  ;;  %1190 = vadd.xlane.f32.xlu1 %v1189_v14  ;;  %v1250_v16 = vpop.permute.xlu0 %1249 }
 0xad8   :  { %v1255_v48 = vsel %vm201_vm1, %v1250_v16, 0  ;;  %1715 = vmatmul.msk.bf16.vlgmr.msrb.gmra.mxu3 %vm166_vm2, %v1192_v10 }
 0xad9   :  { %1885 = vpow2.f32 %v1125_v25  ;;  %1264 = vmatpush.bf16.msra.mxu2 %v1255_v48 }
 0xada   :  { %v1297_v17 = vpop.xlane.xlu2 %1296 }
 0xadb   :  { %v1298_v22 = vsub.f32 %v1291_v46, %v1297_v17 }
 0xadc   :  { %1378 = vmatpush.bf16.xpose.msrb.mxu0 %v1366_v8 }
 0xadd   :  { %v1299_v24 = vmul.f32 1.442695, %v1298_v22 }
 0xadf   :  { %v1886_v55 = vpop.eup %1885 }
 0xae0   :  { %v1130_v57 = vpack.c.bf16 %v1886_v55, %v1886_v55  ;;  %v1127_v34 = vsel %vm166_vm2, %v1886_v55, 0.0 }
 0xae2   :  { %1713 = vmatmul.msk.bf16.vlgmr.msrb.gmra.mxu2 %vm166_vm2, %v1130_v57 }
 0xae4   :  { %v1241_v18 = vpop.xlane.xlu1 %1240 }
 0xae5   :  { %v1242_v21 = vsub.f32 %v1235_v50, %v1241_v18 }
 0xae7   :  { %v1243_v23 = vmul.f32 1.442695, %v1242_v21 }
 0xae9   :  { %1887 = vpow2.f32 %v1243_v23 }
 0xaea   :  { %1889 = vpow2.f32 %v1299_v24 }
 0xaef   :  { %v1888_v26 = vpop.eup %1887 }
 0xaf0   :  { %v1248_v27 = vpack.c.bf16 %v1888_v26, %v1888_v26  ;;  %v1245_v28 = vsel %vm166_vm2, %v1888_v26, 0.0  ;;  %v1890_v29 = vpop.eup %1889 }
 0xaf1   :  { %1246 = vadd.xlane.f32.xlu2 %v1245_v28  ;;  %v1301_v30 = vsel %vm166_vm2, %v1890_v29, 0.0  ;;  %v1304_v33 = vpack.c.bf16 %v1890_v29, %v1890_v29 }
 0xaf2   :  { %1717 = vmatmul.msk.bf16.vlgmr.msra.gmra.mxu2 %vm166_vm2, %v1248_v27 }
 0xaf9   :  { %1302 = vadd.xlane.f32.xlu2 %v1301_v30 }
 0xafc   :  { %v1306_v12 = vpop.permute.xlu1 %1305 }
 0xafd   :  { %v1311_v13 = vsel %vm201_vm1, %v1306_v12, 0 }
 0xafe   :  { %1320 = vmatpush.bf16.msra.mxu3 %v1311_v13 }
 0xb01   :  { %1719 = vmatmul.msk.bf16.vlgmr.msra.gmra.mxu3 %vm166_vm2, %v1304_v33  ;;  %1128 = vadd.xlane.f32.xlu2 %v1127_v34 }
 0xb02   :  { %v948_v37 = vpop.xlane.xlu0 %947 }
 0xb03   :  { %1891 = vrcp.f32 %v948_v37 }
 0xb09   :  { %v1892_v41 = vpop.eup %1891 }
 0xb0a   :  { %v972_v44 = vmul.f32 %v1892_v41, %v2416_v56 }
 0xb3a   :  { %v1060_v61 = vpop.xlane.xlu0 %1059 }
 0xb42   :  { %v886_v9 = vpop.xlane.xlu0 %885 }
 0xb44   :  { %v1004_v50 = vpop.xlane.xlu2 %1003 }
 0xb4a   :  { %v1191_v38 = vpop.xlane.xlu1 %1190 }
 0xb4b   :  { %v1079_v36 = vpop.f32.mrf.mxu3  ;;  %1893 = vrcp.f32 %v1191_v38 }
 0xb4c   :  { %1895 = vrcp.f32 %v1004_v50 }
 0xb51   :  { %v1894_v42 = vpop.eup %1893 }
 0xb52   :  { %v1896_v53 = vpop.eup %1895 }
 0xb53   :  { %v1081_v39 = vpop.f32.mrf.mxu3 }
 0xb55   :  { %v1023_v40 = vpop.f32.mrf.mxu2 }
 0xb56   :  { %v1028_v59 = vmul.f32 %v1896_v53, %v1023_v40  ;;  %v1773_v53 = vld [vmem:[%s2534_s12 + $0x10] sm:$0xff] }
 0xb5b   :  { %v1210_v43 = vpop.f32.mrf.mxu3 }
 0xb5c   :  { %v1215_v46 = vmul.f32 %v1894_v42, %v1210_v43 }
 0xb5d   :  { %v1025_v47 = vpop.f32.mrf.mxu2 }
 0xb5e   :  { %v1809_v15 = vpack.i.bf16 %v1215_v46, %v972_v44 }
 0xb60   :  { %1810 = vrot.lane.b32.xlu0 %v1809_v15, %s2574_s5 }
 0xb63   :  { %v1212_v49 = vpop.f32.mrf.mxu3 }
 0xb64   :  { %v1247_v51 = vpop.xlane.xlu2 %1246 }
 0xb65   :  { %v1151_v11 = vpop.f32.mrf.mxu2  ;;  %1897 = vrcp.f32 %v1247_v51 }
 0xb66   :  { %1899 = vrcp.f32 %v1060_v61 }
 0xb6b   :  { %v1898_v54 = vpop.eup %1897 }
 0xb6c   :  { %v1303_v56 = vpop.xlane.xlu2 %1302  ;;  %v1900_v63 = vpop.eup %1899 }
 0xb6d   :  { %v1153_v52 = vpop.f32.mrf.mxu2  ;;  %1901 = vrcp.f32 %v1303_v56  ;;  %v1084_v1 = vmul.f32 %v1900_v63, %v1079_v36 }
 0xb6e   :  { %1903 = vrcp.f32 %v886_v9 }
 0xb73   :  { %v1902_v0 = vpop.eup %1901 }
 0xb74   :  { %v1129_v10 = vpop.xlane.xlu2 %1128  ;;  %v1904_v25 = vpop.eup %1903 }
 0xb75   :  { %v1266_v58 = vpop.f32.mrf.mxu2  ;;  %1905 = vrcp.f32 %v1129_v10  ;;  %v913_v17 = vmul.f32 %v1904_v25, %v2403_v31  ;;  %v1830_v31 = vld [vmem:[%s2533_s11] ss:$0 sm:$0xff]  ;;  %s1616_s11 = sshll.u32 %s2544_s22, 4  ;;  %s1617_s11 = int_to_ptr.hbm [resolvable:$true] %s1616_s11 }
 0xb76   :  { %v1271_v45 = vmul.f32 %v1898_v54, %v1266_v58  ;;  %v1486_v54 = vsel %vm124_vm0, %v1773_v53, 0  ;;  %v1772_v58 = vld [vmem:[%s2534_s12 + $0x8] sm:$0xff] }
 0xb78   :  { %v1814_v60 = vpack.i.bf16 %v1271_v45, %v1028_v59  ;;  %v1483_v59 = vsel %vm124_vm0, %v1772_v58, 0  ;;  %v1771_v45 = vld [vmem:[%s2534_s12] sm:$0xff] }
 0xb79   :  { %v1480_v61 = vsel %vm124_vm0, %v1771_v45, 0 }
 0xb7a   :  { %1815 = vrot.lane.b32.xlu1 %v1814_v60, %s2575_s25 }
 0xb7b   :  { %v1906_v16 = vpop.eup %1905 }
 0xb7c   :  { %v1156_v18 = vmul.f32 %v1906_v16, %v1151_v11  ;;  %v1831_v16 = vld [vmem:[%s2540_s18] ss:$0 sm:$0xff] }
 0xb7d   :  { %v1268_v62 = vpop.f32.mrf.mxu2 }
 0xb84   :  { %v1322_v32 = vpop.f32.mrf.mxu3 }
 0xb85   :  { %v1327_v2 = vmul.f32 %v1902_v0, %v1322_v32 }
 0xb87   :  { %v1819_v3 = vpack.i.bf16 %v1327_v2, %v1084_v1 }
 0xb89   :  { %1820 = vrot.lane.b32.xlu2 %v1819_v3, %s2576_s2 }
 0xb8c   :  { %v1324_v4 = vpop.f32.mrf.mxu3 }
 0xbd2   :  { %v1811_v14 = vpop.permute.xlu0 %1810 }
 0xbd3   :  { %v1813_v48 = vunpack.i.h.bf16 %v1811_v14  ;;  %v1812_v55 = vunpack.i.l.bf16 %v1811_v14 }
 0xbd5   :  { %v1340_v24 = vsel %vm166_vm2, %v1156_v18, %v1813_v48  ;;  %v1097_v26 = vsel %vm166_vm2, %v913_v17, %v1812_v55  ;;  %v1832_v17 = vld [vmem:[%s2541_s19] ss:$0 sm:$0xff] }
 0xbe3   :  { %v1821_v57 = vpop.permute.xlu2 %1820 }
 0xbe4   :  { %v1823_v27 = vunpack.i.h.bf16 %v1821_v57  ;;  %v1822_v28 = vunpack.i.l.bf16 %v1821_v57 }
 0xbec   :  { %v1816_v21 = vpop.permute.xlu1 %1815 }
 0xbed   :  { %v1818_v22 = vunpack.i.h.bf16 %v1816_v21  ;;  %v1817_v23 = vunpack.i.l.bf16 %v1816_v21 }
 0xbef   :  { %v1098_v29 = vsel %vm401_vm3, %v1097_v26, %v1817_v23  ;;  %v1341_v30 = vsel %vm401_vm3, %v1340_v24, %v1818_v22  ;;  %vm1526_vm3 = vcmask 523264  }
 0xbf0   :  { %v1099_v12 = vsel %vm403_vm4, %v1098_v29, %v1822_v28  ;;  %v1342_v13 = vsel %vm403_vm4, %v1341_v30, %v1823_v27  ;;  %v1776_v27 = vld [vmem:[%s2536_s14 + $0x8] sm:$0xff]  ;;  %v1775_v29 = vld [vmem:[%s2536_s14] sm:$0xff] }
 0xbf1   :  { %v1343_v33 = vpack.c.bf16 %v1342_v13, %v1099_v12  ;;  %v1534_v28 = vsel %vm1526_vm3, %v1776_v27, 0  ;;  %v1531_v30 = vsel %vm1526_vm3, %v1775_v29, 0  ;;  %v1833_v13 = vld [vmem:[%s2535_s13] ss:$0 sm:$0xff] }
 0xbf2   :  { %1542 = vmatpush.bf16.xpose.msrb.mxu1 %v1534_v28 }
 0xbf3   :  { %1728 = vmatmul.msk.bf16.vlgmr.msrb.gmra.mxu0 %vm124_vm0, %v1343_v33 }
 0xbfa   :  { %1543 = vmatpush.bf16.xpose.msrb.mxu1 %v1531_v30 }
 0xc70   :  { %v1380_v34 = vpop.f32.mrf.mxu0 }
 0xc71   :  { %v1381_v36 = vadd.f32 %v1830_v31, %v1380_v34 }
 0xc73   :  { %v1385_v37 = vadd.f32 %v1381_v36, %v2318_v19 }
 0xc75   :  { %v1387_v38 = vsel %vm124_vm0, %v1385_v37, 0.0 }
 0xc76   :  { %1388 = vadd.xlane.f32.xlu0 %v1387_v38 }
 0xc78   :  { %v1382_v39 = vpop.f32.mrf.mxu0 }
 0xc79   :  { %v1383_v40 = vadd.f32 %v1830_v31, %v1382_v39  ;;  %v1834_v39 = vld [vmem:[%s2537_s15] ss:$0 sm:$0xff] }
 0xc7b   :  { %v1386_v41 = vadd.f32 %v1383_v40, %v2320_v20  ;;  %v1774_v20 = vld [vmem:[%s2534_s12 + $0x18] sm:$0xff] }
 0xc7c   :  { %v1489_v52 = vsel %vm124_vm0, %v1774_v20, 0 }
 0xc7d   :  { %v1390_v42 = vsel %vm124_vm0, %v1386_v41, 0.0  ;;  %1495 = vmatpush.bf16.xpose.msrb.mxu2 %v1489_v52 }
 0xc7e   :  { %1391 = vadd.xlane.f32.xlu2 %v1390_v42 }
 0xc85   :  { %1496 = vmatpush.bf16.xpose.msrb.mxu2 %v1486_v54 }
 0xc8d   :  { %1497 = vmatpush.bf16.xpose.msrb.mxu2 %v1483_v59 }
 0xc95   :  { %1498 = vmatpush.bf16.xpose.msrb.mxu2 %v1480_v61 }
 0xce9   :  { %v1389_v43 = vpop.xlane.xlu0 %1388 }
 0xcea   :  { %v1393_v44 = vmul.f32 %v1389_v43, %v2284_v35 }
 0xcec   :  { %v1395_v46 = vsub.f32 %v1385_v37, %v1393_v44 }
 0xcee   :  { %v1397_v47 = vmul.f32 %v1395_v46, %v1395_v46 }
 0xcf0   :  { %v1399_v15 = vsel %vm124_vm0, %v1397_v47, 0.0 }
 0xcf1   :  { %v1392_v49 = vpop.xlane.xlu2 %1391  ;;  %1400 = vadd.xlane.f32.xlu1 %v1399_v15 }
 0xcf2   :  { %v1394_v19 = vmul.f32 %v1392_v49, %v2284_v35 }
 0xcf4   :  { %v1396_v50 = vsub.f32 %v1386_v41, %v1394_v19 }
 0xcf6   :  { %v1398_v11 = vmul.f32 %v1396_v50, %v1396_v50 }
 0xcf8   :  { %v1402_v51 = vsel %vm124_vm0, %v1398_v11, 0.0 }
 0xcf9   :  { %1403 = vadd.xlane.f32.xlu0 %v1402_v51 }
 0xd64   :  { %v1401_v60 = vpop.xlane.xlu1 %1400 }
 0xd65   :  { %v1405_v56 = vmul.f32 %v1401_v60, %v2284_v35 }
 0xd67   :  { %v1407_v62 = vadd.f32 1e-05, %v1405_v56 }
 0xd69   :  { %1907 = vrsqrt.f32 %v1407_v62  ;;  %vm1415_vm13 = vweird.f32 %v1407_v62 }
 0xd6c   :  { %v1404_v63 = vpop.xlane.xlu0 %1403 }
 0xd6d   :  { %v1406_v0 = vmul.f32 %v1404_v63, %v2284_v35 }
 0xd6f   :  { %v1908_v32 = vpop.eup %1907  ;;  %v1408_v1 = vadd.f32 1e-05, %v1406_v0 }
 0xd70   :  { %v1410_v2 = vmul.f32 %v1908_v32, %v1407_v62  ;;  %vm1416_vm12 = vweird.f32 %v1908_v32 }
 0xd71   :  { %1909 = vrsqrt.f32 %v1408_v1  ;;  %vm1417_vm14 = vmor %vm1415_vm13, %vm1416_vm12  ;;  %vm1425_vm1 = vweird.f32 %v1408_v1 }
 0xd72   :  { %v1411_v3 = vmul.f32 %v1908_v32, %v1410_v2 }
 0xd74   :  { %v1412_v4 = vmul.f32 0.5, %v1411_v3 }
 0xd76   :  { %v1413_v5 = vsub.f32 1.5, %v1412_v4 }
 0xd77   :  { %v1910_v6 = vpop.eup %1909 }
 0xd78   :  { %v1414_v7 = vmul.f32 %v1908_v32, %v1413_v5  ;;  %v1420_v8 = vmul.f32 %v1910_v6, %v1408_v1  ;;  %vm1426_vm15 = vweird.f32 %v1910_v6 }
 0xd79   :  { %vm1427_vm2 = vmor %vm1425_vm1, %vm1426_vm15 }
 0xd7a   :  { %v1421_v9 = vmul.f32 %v1910_v6, %v1420_v8  ;;  %v1418_v10 = vsel %vm1417_vm14, %v1908_v32, %v1414_v7 }
 0xd7b   :  { %v1429_v48 = vmul.f32 %v1418_v10, %v1395_v46 }
 0xd7c   :  { %v1422_v14 = vmul.f32 0.5, %v1421_v9  ;;  %v1836_v9 = vld [vmem:[%s2543_s21] ss:$0 sm:$0xff]  ;;  %s1957_s21 = smov 128  }
 0xd7d   :  { %v1435_v18 = vmul.f32 %v1831_v16, %v1429_v48 }
 0xd7e   :  { %v1423_v25 = vsub.f32 1.5, %v1422_v14 }
 0xd7f   :  { %v1441_v23 = vadd.f32 %v1832_v17, %v1435_v18 }
 0xd80   :  { %v1424_v55 = vmul.f32 %v1910_v6, %v1423_v25 }
 0xd82   :  { %v1428_v57 = vsel %vm1427_vm2, %v1910_v6, %v1424_v55  ;;  %v1835_v6 = vld [vmem:[%s2542_s20] ss:$0 sm:$0xff]  ;;  %s1956_s20 = smov [#allocation2]  }
 0xd83   :  { %v1430_v21 = vmul.f32 %v1428_v57, %v1396_v50  ;;  %s1614_s1 = sshll.u32 %s1956_s20, 4  ;;  %s1615_s1 = int_to_ptr.vmem [resolvable:$true] %s1614_s1 }
 0xd85   :  { %v1436_v22 = vmul.f32 %v1831_v16, %v1430_v21 }
 0xd87   :  { %v1442_v24 = vadd.f32 %v1832_v17, %v1436_v22 }
 0xd89   :  { %v1443_v26 = vpack.c.bf16 %v1442_v24, %v1441_v23 }
 0xd8b   :  { %1745 = vmatmul.msk.bf16.vlgmr.msrb.gmra.mxu2 %vm124_vm0, %v1443_v26 }
 0xe0e   :  { %v1500_v12 = vpop.f32.mrf.mxu2 }
 0xe0f   :  { %v1501_v33 = vadd.f32 %v1833_v13, %v1500_v12 }
 0xe11   :  { %v1505_v36 = vmax.f32 %v1501_v33, 0.0 }
 0xe16   :  { %v1502_v31 = vpop.f32.mrf.mxu2 }
 0xe17   :  { %v1503_v34 = vadd.f32 %v1833_v13, %v1502_v31 }
 0xe19   :  { %v1506_v37 = vmax.f32 %v1503_v34, 0.0 }
 0xe1b   :  { %v1507_v38 = vpack.c.bf16 %v1506_v37, %v1505_v36 }
 0xe1d   :  { %1754 = vmatmul.msk.bf16.vlgmr.msrb.gmra.mxu1 %vm1526_vm3, %v1507_v38 }
 0xe9a   :  { %v1545_v40 = vpop.f32.mrf.mxu1 }
 0xe9b   :  { %v1546_v41 = vadd.f32 %v1834_v39, %v1545_v40 }
 0xe9d   :  { %v1550_v42 = vadd.f32 %v1546_v41, %v1441_v23 }
 0xe9f   :  { %v1552_v43 = vsel %vm124_vm0, %v1550_v42, 0.0 }
 0xea0   :  { %1553 = vadd.xlane.f32.xlu2 %v1552_v43 }
 0xea2   :  { %v1547_v44 = vpop.f32.mrf.mxu1 }
 0xea3   :  { %v1548_v46 = vadd.f32 %v1834_v39, %v1547_v44 }
 0xea5   :  { %v1551_v47 = vadd.f32 %v1548_v46, %v1442_v24 }
 0xea7   :  { %v1555_v15 = vsel %vm124_vm0, %v1551_v47, 0.0 }
 0xea8   :  { %1556 = vadd.xlane.f32.xlu0 %v1555_v15 }
 0xf13   :  { %v1554_v49 = vpop.xlane.xlu2 %1553 }
 0xf14   :  { %v1558_v19 = vmul.f32 %v1554_v49, %v2284_v35 }
 0xf16   :  { %v1560_v50 = vsub.f32 %v1550_v42, %v1558_v19 }
 0xf18   :  { %v1562_v11 = vmul.f32 %v1560_v50, %v1560_v50 }
 0xf1a   :  { %v1564_v51 = vsel %vm124_vm0, %v1562_v11, 0.0 }
 0xf1b   :  { %v1557_v20 = vpop.xlane.xlu0 %1556  ;;  %1565 = vadd.xlane.f32.xlu1 %v1564_v51 }
 0xf1c   :  { %v1559_v52 = vmul.f32 %v1557_v20, %v2284_v35 }
 0xf1e   :  { %v1561_v53 = vsub.f32 %v1551_v47, %v1559_v52 }
 0xf20   :  { %v1563_v54 = vmul.f32 %v1561_v53, %v1561_v53 }
 0xf22   :  { %v1567_v58 = vsel %vm124_vm0, %v1563_v54, 0.0 }
 0xf23   :  { %1568 = vadd.xlane.f32.xlu2 %v1567_v58 }
 0xf8e   :  { %v1566_v59 = vpop.xlane.xlu1 %1565 }
 0xf8f   :  { %v1570_v45 = vmul.f32 %v1566_v59, %v2284_v35 }
 0xf91   :  { %v1572_v60 = vadd.f32 1e-05, %v1570_v45 }
 0xf93   :  { %1911 = vrsqrt.f32 %v1572_v60  ;;  %vm1580_vm5 = vweird.f32 %v1572_v60 }
 0xf96   :  { %v1569_v61 = vpop.xlane.xlu2 %1568 }
 0xf97   :  { %v1571_v56 = vmul.f32 %v1569_v61, %v2284_v35 }
 0xf99   :  { %v1912_v62 = vpop.eup %1911  ;;  %v1573_v63 = vadd.f32 1e-05, %v1571_v56 }
 0xf9a   :  { %v1575_v0 = vmul.f32 %v1912_v62, %v1572_v60  ;;  %vm1581_vm4 = vweird.f32 %v1912_v62 }
 0xf9b   :  { %1913 = vrsqrt.f32 %v1573_v63  ;;  %vm1582_vm6 = vmor %vm1580_vm5, %vm1581_vm4  ;;  %vm1590_vm8 = vweird.f32 %v1573_v63 }
 0xf9c   :  { %v1576_v32 = vmul.f32 %v1912_v62, %v1575_v0 }
 0xf9e   :  { %v1577_v1 = vmul.f32 0.5, %v1576_v32 }
 0xfa0   :  { %v1578_v2 = vsub.f32 1.5, %v1577_v1 }
 0xfa1   :  { %v1914_v3 = vpop.eup %1913 }
 0xfa2   :  { %v1579_v4 = vmul.f32 %v1912_v62, %v1578_v2  ;;  %v1585_v5 = vmul.f32 %v1914_v3, %v1573_v63  ;;  %vm1591_vm7 = vweird.f32 %v1914_v3 }
 0xfa3   :  { %vm1592_vm9 = vmor %vm1590_vm8, %vm1591_vm7 }
 0xfa4   :  { %v1583_v7 = vsel %vm1582_vm6, %v1912_v62, %v1579_v4  ;;  %v1586_v8 = vmul.f32 %v1914_v3, %v1585_v5 }
 0xfa5   :  { %v1594_v35 = vmul.f32 %v1583_v7, %v1560_v50 }
 0xfa6   :  { %v1587_v10 = vmul.f32 0.5, %v1586_v8 }
 0xfa7   :  { %v1600_v14 = vmul.f32 %v1835_v6, %v1594_v35 }
 0xfa8   :  { %v1588_v25 = vsub.f32 1.5, %v1587_v10 }
 0xfa9   :  { %v1606_v16 = vadd.f32 %v1836_v9, %v1600_v14 }
 0xfaa   :  { %v1589_v48 = vmul.f32 %v1914_v3, %v1588_v25 }
 0xfab   :  { %1608 = vst.msk [vmem:[#allocation2] sm:$0xff] %vm124_vm0, %v1606_v16 }
 0xfac   :  { %v1593_v55 = vsel %vm1592_vm9, %v1914_v3, %v1589_v48 }
 0xfad   :  { %v1595_v57 = vmul.f32 %v1593_v55, %v1561_v53 }
 0xfaf   :  { %v1601_v17 = vmul.f32 %v1835_v6, %v1595_v57 }
 0xfb1   :  { %v1607_v18 = vadd.f32 %v1836_v9, %v1601_v17 }
 0xfb3   :  { %1609 = vst.msk [vmem:[#allocation2 + $0x8] sm:$0xff] %vm124_vm0, %v1607_v18 }
 0xfb4   :  { %1622 = dma.vmem_to_hbm [thread:$0]  %s1615_s1, 256, %s1617_s11, [#allocation3], %s1957_s21, %s1957_s21, %s2574_s5  }
 0xfb5   :  { %1939 = dma.done.wait [#allocation3], 256  }
 0xfb6   :  { %1940 = vsyncadd [#allocation3], 4294967040 }
 0xfb7   :  { %1627 = vsyncpa [#allocation3], 1 }

</bundles_post_ra>
